<compile_context>
chip_gen: v7x
topology: tpu7x:2x2x1
jax: 0.10.0
libtpu: 0.0.40
codegen_flags: <defaults>
</compile_context>

<pallas_src>
import math

import jax
import jax.numpy as jnp
from jax import lax
from jax.experimental import pallas as pl
from jax.experimental.pallas import tpu as pltpu

EMBED = 32
NHEAD = 4
HEAD_DIM = EMBED // NHEAD
DFF = 2048          # hard-coded in nn.TransformerEncoderLayer(..., dim_feedforward=2048)
FF_CHUNK = 512      # DFF chunking to bound live vregs (see review)
LAYERS = 2
FEAT_DIM = 16
WORD_DIM = 24
PROJ_IN_DIM = WORD_DIM + FEAT_DIM   # fused caption|image projection input width
VOCAB = 100
LN_EPS = 1e-5
L2_EPS = 1e-8
NEG_INF = -1e9


# --------------------------------------------------------------------------
# fused Pallas kernel
# --------------------------------------------------------------------------
def _layernorm(x, g, b):
    mu = jnp.mean(x, axis=-1, keepdims=True)
    var = jnp.mean((x - mu) ** 2, axis=-1, keepdims=True)
    return (x - mu) * lax.rsqrt(var + LN_EPS) * g + b


def _fused_tern_kernel(proj_in_ref, proj_w_ref, proj_b_ref,
                       maskadd_ref, head_mask_ref, same_head_ref, pool_ref,
                       wqkv_ref, bqkv_ref, wo_ref, vecs_ref,
                       w1_ref, b1_ref, w2t_ref,
                       out_ref, x_sc):
    layer = pl.program_id(0)                       # sequential (carried in x_sc)
    BBL, E = x_sc.shape                            # BBL = 2 * B * L (both branches fused)
    HBBL = NHEAD * BBL

    # ---- step 0: cap_proj / img_proj for both branches in one matmul.
    # proj_in rows carry word features (caption groups) or region features
    # (image groups) in disjoint column ranges; proj_w is [cap_w ; img_w].
    @pl.when(layer == 0)
    def _project():
        x0 = jnp.dot(proj_in_ref[...], proj_w_ref[...],
                     preferred_element_type=jnp.float32) + proj_b_ref[...]
        x_sc[...] = x0

    # ---- one post-norm nn.TransformerEncoderLayer (eval mode -> dropout = id)
    x = x_sc[...]                                  # (BBL, E) f32
    x_bf = x.astype(jnp.bfloat16)

    # packed QKV projection (bf16 operands, f32 accumulation);
    # 1/sqrt(HEAD_DIM) is already folded into Wq / bq.
    qkv = jnp.dot(x_bf, wqkv_ref[...],
                  preferred_element_type=jnp.float32) + bqkv_ref[...]
    q = qkv[:, 0:E].astype(jnp.bfloat16)
    k = qkv[:, E:2 * E].astype(jnp.bfloat16)
    v = qkv[:, 2 * E:3 * E].astype(jnp.bfloat16)

    # multi-head attention with (head, group, position) laid out along the key
    # axis: key column h*BBL + r holds K[r] masked to head h's channels, so a
    # single NT matmul gives every (query row, head, key) score; cross-group
    # and padded-key columns are killed by the precomputed additive mask.
    hm = head_mask_ref[...]                        # (H*BBL, E) bf16 constant
    k_stack = jnp.broadcast_to(k[None], (NHEAD, BBL, E)).reshape(HBBL, E) * hm
    v_stack = jnp.broadcast_to(v[None], (NHEAD, BBL, E)).reshape(HBBL, E) * hm

    s = lax.dot_general(q, k_stack, (((1,), (1,)), ((), ())),   # (BBL, H*BBL)
                        preferred_element_type=jnp.float32)
    s = s + maskadd_ref[...]
    s = s - jnp.max(s, axis=-1, keepdims=True)     # row max is constant per head-chunk -> valid
    p = jnp.exp(s)

    # per-(row, head) softmax denominators via one block-diagonal matmul;
    # guard against a fully-underflowed head, divide on the EUP.
    denom = jnp.dot(p.astype(jnp.bfloat16), same_head_ref[...],
                    preferred_element_type=jnp.float32)
    inv = pl.reciprocal(jnp.maximum(denom, 1e-30), approx=True)
    p_norm = (p * inv).astype(jnp.bfloat16)

    # masked v_stack makes this single matmul reproduce the concatenated heads
    attn = jnp.dot(p_norm, v_stack, preferred_element_type=jnp.float32)  # (BBL, E)

    vecs = vecs_ref[...]                                                 # (6, E)
    bo = vecs[0:1, :]
    g1 = vecs[1:2, :]
    be1 = vecs[2:3, :]
    b2 = vecs[3:4, :]
    g2 = vecs[4:5, :]
    be2 = vecs[5:6, :]

    attn = jnp.dot(attn.astype(jnp.bfloat16), wo_ref[...],
                   preferred_element_type=jnp.float32) + bo
    x1 = _layernorm(x + attn, g1, be1)

    # FFN, chunked along DFF to keep the (BBL, chunk) intermediate in-register:
    # bf16 MXU operands, f32 accumulation; w2 stored pre-transposed (E, DFF).
    x1_bf = x1.astype(jnp.bfloat16)
    ff_acc = x1 + b2                               # residual + second bias
    for c in range(DFF // FF_CHUNK):
        lo = c * FF_CHUNK
        hid = jnp.dot(x1_bf, w1_ref[:, lo:lo + FF_CHUNK],
                      preferred_element_type=jnp.float32) + b1_ref[:, lo:lo + FF_CHUNK]
        hid = jnp.maximum(hid, 0.0).astype(jnp.bfloat16)          # relu
        ff_acc = ff_acc + lax.dot_general(
            hid, w2t_ref[:, lo:lo + FF_CHUNK], (((1,), (1,)), ((), ())),
            preferred_element_type=jnp.float32)
    x_new = _layernorm(ff_acc, g2, be2)
    x_sc[...] = x_new

    # ---- last layer: Aggregator('mean') over valid positions + l2norm.
    # pool_ref already contains valid-mask / count, so the masked mean is one
    # tiny matmul; only the final (2B, E) embeddings go back to HBM.
    @pl.when(layer == pl.num_programs(0) - 1)
    def _aggregate():
        mean = jnp.dot(pool_ref[...], x_new, preferred_element_type=jnp.float32)
        norm = jnp.sqrt(jnp.sum(mean * mean, axis=-1, keepdims=True)) + L2_EPS
        out_ref[...] = (mean * pl.reciprocal(norm, approx=True)).astype(out_ref.dtype)


# --------------------------------------------------------------------------
# wrapper: one pallas_call for the whole joint encoder forward
# --------------------------------------------------------------------------
def tern_forward(params, features, captions, feat_len, cap_len):
    B, Nf, _ = features.shape
    Lc = captions.shape[1]
    L = max(Lc, Nf)
    BB = 2 * B                       # caption groups 0..B-1, image groups B..2B-1
    BBL = BB * L
    HBBL = NHEAD * BBL

    # TODO(synk): EncoderTextBERT internals are not in the spec; approximated by a
    # deterministic token-embedding lookup (plain JAX gather, outside the kernel).
    c_emb = params['word_emb'][captions]                                 # (B, Lc, WORD_DIM)
    c_emb = jnp.pad(c_emb, ((0, 0), (0, L - Lc), (0, 0)))
    # TODO(synk): ImageEncoder (bottom-up transformer + box pos-encoding) not in the
    # spec; raw region features are used directly and `boxes` is unused.
    i_emb = jnp.pad(features, ((0, 0), (0, L - Nf), (0, 0)))             # (B, L, FEAT_DIM)

    # fused projection input: caption rows use columns [0, WORD_DIM),
    # image rows use columns [WORD_DIM, WORD_DIM+FEAT_DIM)
    cap_rows = jnp.pad(c_emb, ((0, 0), (0, 0), (0, FEAT_DIM)))
    img_rows = jnp.pad(i_emb, ((0, 0), (0, 0), (WORD_DIM, 0)))
    proj_in = jnp.concatenate([cap_rows, img_rows], axis=0)
    proj_in = proj_in.reshape(BBL, PROJ_IN_DIM).astype(jnp.bfloat16)

    proj_b = jnp.concatenate([
        jnp.broadcast_to(params['cap_proj_b'], (B * L, EMBED)),
        jnp.broadcast_to(params['img_proj_b'], (B * L, EMBED))], axis=0)  # (BBL, E) f32

    # per-group valid lengths (PyTorch key_padding_mask semantics)
    lens = jnp.concatenate([cap_len, feat_len]).astype(jnp.int32)        # (BB,)
    pos = jnp.arange(L, dtype=jnp.int32)
    key_valid = pos[None, :] < lens[:, None]                             # (BB, L)
    kv_flat = key_valid.reshape(BBL)
    group = jnp.repeat(jnp.arange(BB, dtype=jnp.int32), L)               # (BBL,)
    same_group = group[:, None] == group[None, :]
    allowed = jnp.logical_and(same_group, kv_flat[None, :])
    mask_base = jnp.where(allowed, 0.0, NEG_INF).astype(jnp.float32)     # (BBL, BBL)
    maskadd = jnp.tile(mask_base, (1, NHEAD))                            # (BBL, H*BBL), head-major keys

    # mean-pooling matrix with the valid mask and 1/count folded in
    counts = jnp.maximum(jnp.sum(key_valid, axis=1), 1).astype(jnp.float32)          # (BB,)
    onehot = (jnp.arange(BB, dtype=jnp.int32)[:, None] == group[None, :]).astype(jnp.float32)
    pool_w = onehot * kv_flat.astype(jnp.float32)[None, :] / counts[:, None]         # (BB, BBL)

    # hoisted constant masks (built once, bf16)
    row_head = jnp.repeat(jnp.arange(NHEAD, dtype=jnp.int32), BBL)       # (H*BBL,)
    col_head = jnp.arange(EMBED, dtype=jnp.int32) // HEAD_DIM            # (E,)
    head_mask = (row_head[:, None] == col_head[None, :]).astype(jnp.bfloat16)   # (H*BBL, E)
    key_head = jnp.arange(HBBL, dtype=jnp.int32) // BBL
    same_head = (key_head[:, None] == key_head[None, :]).astype(jnp.bfloat16)   # (H*BBL, H*BBL)

    full2 = lambda l: (0, 0)
    by_layer = lambda l: (l, 0, 0)

    out = pl.pallas_call(
        _fused_tern_kernel,
        out_shape=jax.ShapeDtypeStruct((BB, EMBED), jnp.float32),
        grid_spec=pltpu.PrefetchScalarGridSpec(
            num_scalar_prefetch=0,
            grid=(LAYERS,),
            in_specs=[
                pl.BlockSpec((BBL, PROJ_IN_DIM), full2),                 # proj_in (bf16)
                pl.BlockSpec((PROJ_IN_DIM, EMBED), full2),               # proj_w  (bf16)
                pl.BlockSpec((BBL, EMBED), full2),                       # proj_b
                pl.BlockSpec((BBL, HBBL), full2),                        # additive key mask
                pl.BlockSpec((HBBL, EMBED), full2),                      # per-head channel mask
                pl.BlockSpec((HBBL, HBBL), full2),                       # same-head block-diag
                pl.BlockSpec((BB, BBL), full2),                          # mean-pool matrix
                pl.BlockSpec((None, EMBED, 3 * EMBED), by_layer),        # wqkv (bf16)
                pl.BlockSpec((None, 1, 3 * EMBED), by_layer),            # bqkv
                pl.BlockSpec((None, EMBED, EMBED), by_layer),            # wo (bf16)
                pl.BlockSpec((None, 6, EMBED), by_layer),                # bo|ln1|b2|ln2 pack
                pl.BlockSpec((None, EMBED, DFF), by_layer),              # w1 (bf16)
                pl.BlockSpec((None, 1, DFF), by_layer),                  # b1
                pl.BlockSpec((None, EMBED, DFF), by_layer),              # w2^T (bf16)
            ],
            out_specs=pl.BlockSpec((BB, EMBED), full2),
            scratch_shapes=[pltpu.VMEM((BBL, EMBED), jnp.float32)],      # carried x
        ),
        compiler_params=pltpu.CompilerParams(
            dimension_semantics=("arbitrary",)),
    )(proj_in, params['proj_w'], proj_b,
      maskadd, head_mask, same_head, pool_w,
      params['wqkv'], params['bqkv'], params['wo'], params['vecs'],
      params['w1'], params['b1'], params['w2t'])

    cap_aggr = out[:B]      # (B, E), already l2-normalized
    img_aggr = out[B:]
    return img_aggr, cap_aggr


def image_caption_encoder_forward(params, images, captions, cap_lengths, boxes=None):
    """ImageCaptionEncoder.forward: img_lengths = images.shape[1] for every batch item."""
    B = images.shape[0]
    img_lengths = jnp.full((B,), images.shape[1], dtype=jnp.int32)
    return tern_forward(params, images, captions, img_lengths, cap_lengths)


# --------------------------------------------------------------------------
# parameters (deterministic synthetic init, layer weights stacked for the grid)
# --------------------------------------------------------------------------
def init_params(key):
    def dense(k, din, dout, scale=0.02):
        k1, k2 = jax.random.split(k)
        return (jax.random.normal(k1, (din, dout), jnp.float32) * scale,
                jax.random.normal(k2, (dout,), jnp.float32) * scale)

    keys = jax.random.split(key, 3 + LAYERS)
    params = {}
    params['word_emb'] = jax.random.normal(keys[0], (VOCAB, WORD_DIM), jnp.float32) * 0.02
    iw, ib = dense(keys[1], FEAT_DIM, EMBED)
    cw, cb = dense(keys[2], WORD_DIM, EMBED)
    # combined projection weight: caption input columns first, image columns second
    params['proj_w'] = jnp.concatenate([cw, iw], axis=0).astype(jnp.bfloat16)   # (PROJ_IN_DIM, E)
    params['cap_proj_b'] = cb.reshape(1, EMBED)
    params['img_proj_b'] = ib.reshape(1, EMBED)

    attn_scale = 1.0 / math.sqrt(HEAD_DIM)
    wqkv, bqkv, wo, vecs, w1, b1, w2t = [], [], [], [], [], [], []
    ones = jnp.ones((EMBED,), jnp.float32)
    zeros = jnp.zeros((EMBED,), jnp.float32)
    for i in range(LAYERS):
        lk = jax.random.split(keys[3 + i], 6)
        wq, bq = dense(lk[0], EMBED, EMBED)
        wk, bk = dense(lk[1], EMBED, EMBED)
        wv, bv = dense(lk[2], EMBED, EMBED)
        wo_i, bo_i = dense(lk[3], EMBED, EMBED)
        w1_i, b1_i = dense(lk[4], EMBED, DFF)
        w2_i, b2_i = dense(lk[5], DFF, EMBED)
        # NOTE: weights here use the x @ W (in, out) convention; real PyTorch
        # nn.Linear / in_proj weights are (out, in) and must be transposed/split
        # before loading a checkpoint. 1/sqrt(HEAD_DIM) is folded into Wq / bq.
        wqkv.append(jnp.concatenate([wq * attn_scale, wk, wv], axis=1))      # (E, 3E)
        bqkv.append(jnp.concatenate([bq * attn_scale, bk, bv])[None, :])     # (1, 3E)
        wo.append(wo_i)
        vecs.append(jnp.stack([bo_i, ones, zeros, b2_i, ones, zeros]))       # (6, E)
        w1.append(w1_i)                                                      # (E, DFF)
        b1.append(b1_i[None, :])                                             # (1, DFF)
        w2t.append(w2_i.T)                                                   # (E, DFF) lane-dense

    params['wqkv'] = jnp.stack(wqkv).astype(jnp.bfloat16)
    params['bqkv'] = jnp.stack(bqkv)
    params['wo'] = jnp.stack(wo).astype(jnp.bfloat16)
    params['vecs'] = jnp.stack(vecs)
    params['w1'] = jnp.stack(w1).astype(jnp.bfloat16)
    params['b1'] = jnp.stack(b1)
    params['w2t'] = jnp.stack(w2t).astype(jnp.bfloat16)
    return params


# --------------------------------------------------------------------------
if __name__ == "__main__":
    key = jax.random.PRNGKey(0)
    kp, ki, kc, kb = jax.random.split(key, 4)

    B, Nf, Lc = 2, 8, 8
    params = init_params(kp)

    images = jax.random.normal(ki, (B, Nf, FEAT_DIM), jnp.float32)           # region features
    captions = jax.random.randint(kc, (B, Lc), 0, VOCAB, dtype=jnp.int32)    # token ids
    cap_lengths = jnp.array([8, 6], dtype=jnp.int32)
    boxes = jax.random.uniform(kb, (B, Nf, 4), jnp.float32)

    fwd = jax.jit(image_caption_encoder_forward)
    img_emb_aggr, cap_emb_aggr = fwd(params, images, captions, cap_lengths, boxes)
    jax.block_until_ready((img_emb_aggr, cap_emb_aggr))

    assert img_emb_aggr.shape == (B, EMBED)
    assert cap_emb_aggr.shape == (B, EMBED)
    assert bool(jnp.all(jnp.isfinite(img_emb_aggr))) and bool(jnp.all(jnp.isfinite(cap_emb_aggr)))
    print("KERNEL_OK")
</pallas_src>

<mosaic_0001>
module attributes {stable_mosaic.version = 11 : i64} {
  func.func @_fused_tern_kernel(%arg0: i32, %arg1: memref<32x40xbf16, #tpu.memory_space<vmem>>, %arg2: memref<40x32xbf16, #tpu.memory_space<vmem>>, %arg3: memref<32x32xf32, #tpu.memory_space<vmem>>, %arg4: memref<32x128xf32, #tpu.memory_space<vmem>>, %arg5: memref<128x32xbf16, #tpu.memory_space<vmem>>, %arg6: memref<128x128xbf16, #tpu.memory_space<vmem>>, %arg7: memref<4x32xf32, #tpu.memory_space<vmem>>, %arg8: memref<1x32x96xbf16, #tpu.memory_space<vmem>>, %arg9: memref<1x1x96xf32, #tpu.memory_space<vmem>>, %arg10: memref<1x32x32xbf16, #tpu.memory_space<vmem>>, %arg11: memref<1x6x32xf32, #tpu.memory_space<vmem>>, %arg12: memref<1x32x2048xbf16, #tpu.memory_space<vmem>>, %arg13: memref<1x1x2048xf32, #tpu.memory_space<vmem>>, %arg14: memref<1x32x2048xbf16, #tpu.memory_space<vmem>>, %arg15: memref<4x32xf32, #tpu.memory_space<vmem>>, %arg16: memref<32x32xf32, #tpu.memory_space<vmem>>) attributes {dimension_semantics = [#tpu.dimension_semantics<arbitrary>], iteration_bounds = array<i64: 2>, scalar_prefetch = 0 : i64, scratch_operands = 1 : i64, tpu.core_type = #tpu.core_type<tc>, window_params = [{pipeline_mode = #tpu.pipeline_mode<synchronous>, transform_indices = @transform_0, window_bounds = array<i64: 32, 40>}, {pipeline_mode = #tpu.pipeline_mode<synchronous>, transform_indices = @transform_1, window_bounds = array<i64: 40, 32>}, {pipeline_mode = #tpu.pipeline_mode<synchronous>, transform_indices = @transform_2, window_bounds = array<i64: 32, 32>}, {pipeline_mode = #tpu.pipeline_mode<synchronous>, transform_indices = @transform_3, window_bounds = array<i64: 32, 128>}, {pipeline_mode = #tpu.pipeline_mode<synchronous>, transform_indices = @transform_4, window_bounds = array<i64: 128, 32>}, {pipeline_mode = #tpu.pipeline_mode<synchronous>, transform_indices = @transform_5, window_bounds = array<i64: 128, 128>}, {pipeline_mode = #tpu.pipeline_mode<synchronous>, transform_indices = @transform_6, window_bounds = array<i64: 4, 32>}, {transform_indices = @transform_7, window_bounds = array<i64: 1, 32, 96>}, {transform_indices = @transform_8, window_bounds = array<i64: 1, 1, 96>}, {transform_indices = @transform_9, window_bounds = array<i64: 1, 32, 32>}, {transform_indices = @transform_10, window_bounds = array<i64: 1, 6, 32>}, {transform_indices = @transform_11, window_bounds = array<i64: 1, 32, 2048>}, {transform_indices = @transform_12, window_bounds = array<i64: 1, 1, 2048>}, {transform_indices = @transform_13, window_bounds = array<i64: 1, 32, 2048>}, {pipeline_mode = #tpu.pipeline_mode<synchronous>, transform_indices = @transform_14, window_bounds = array<i64: 4, 32>}]} {
    %c0_i32 = arith.constant 0 : i32
    %0 = arith.cmpi eq, %arg0, %c0_i32 : i32
    %1 = arith.extui %0 : i1 to i32
    %c0_i32_0 = arith.constant 0 : i32
    %2 = arith.cmpi ne, %1, %c0_i32_0 : i32
    scf.if %2 {
      %c0_84 = arith.constant 0 : index
      %c0_85 = arith.constant 0 : index
      %168 = vector.load %arg1[%c0_84, %c0_85] : memref<32x40xbf16, #tpu.memory_space<vmem>>, vector<32x40xbf16>
      %c0_86 = arith.constant 0 : index
      %c0_87 = arith.constant 0 : index
      %169 = vector.load %arg2[%c0_86, %c0_87] : memref<40x32xbf16, #tpu.memory_space<vmem>>, vector<40x32xbf16>
      %cst_88 = arith.constant dense<0.000000e+00> : vector<32x32xf32>
      %170 = tpu.matmul %168, %169, %cst_88 {dimension_numbers = #tpu.dot_dimension_numbers<[1], [0], [0], [1], [0, 0, 1, 1], [], []>} : vector<32x40xbf16>, vector<40x32xbf16>, vector<32x32xf32> -> vector<32x32xf32>
      %c0_89 = arith.constant 0 : index
      %c0_90 = arith.constant 0 : index
      %171 = vector.load %arg3[%c0_89, %c0_90] : memref<32x32xf32, #tpu.memory_space<vmem>>, vector<32x32xf32>
      %172 = arith.addf %170, %171 : vector<32x32xf32>
      %c0_91 = arith.constant 0 : index
      %c0_92 = arith.constant 0 : index
      %173 = vector.load %arg16[%c0_91, %c0_92] : memref<32x32xf32, #tpu.memory_space<vmem>>, vector<32x32xf32>
      tpu.vector_store %arg16[%c0_91, %c0_92], %172 {strides = array<i32>} : memref<32x32xf32, #tpu.memory_space<vmem>>, vector<32x32xf32>,
    } else {
    }
    %c0 = arith.constant 0 : index
    %c0_1 = arith.constant 0 : index
    %3 = vector.load %arg16[%c0, %c0_1] : memref<32x32xf32, #tpu.memory_space<vmem>>, vector<32x32xf32>
    %4 = arith.truncf %3 : vector<32x32xf32> to vector<32x32xbf16>
    %c0_2 = arith.constant 0 : index
    %c0_3 = arith.constant 0 : index
    %c0_4 = arith.constant 0 : index
    %5 = vector.load %arg8[%c0_2, %c0_3, %c0_4] : memref<1x32x96xbf16, #tpu.memory_space<vmem>>, vector<1x32x96xbf16>
    %6 = vector.shape_cast %5 : vector<1x32x96xbf16> to vector<32x96xbf16>
    %cst = arith.constant dense<0.000000e+00> : vector<32x96xf32>
    %7 = tpu.matmul %4, %6, %cst {dimension_numbers = #tpu.dot_dimension_numbers<[1], [0], [0], [1], [0, 0, 1, 1], [], []>} : vector<32x32xbf16>, vector<32x96xbf16>, vector<32x96xf32> -> vector<32x96xf32>
    %c0_5 = arith.constant 0 : index
    %c0_6 = arith.constant 0 : index
    %c0_7 = arith.constant 0 : index
    %8 = vector.load %arg9[%c0_5, %c0_6, %c0_7] : memref<1x1x96xf32, #tpu.memory_space<vmem>>, vector<1x1x96xf32>
    %9 = vector.shape_cast %8 : vector<1x1x96xf32> to vector<1x96xf32>
    %10 = vector.broadcast %9 : vector<1x96xf32> to vector<32x96xf32>
    %11 = arith.addf %7, %10 : vector<32x96xf32>
    %12 = vector.extract_strided_slice %11 {offsets = [0, 0], sizes = [32, 32], strides = [1, 1]} : vector<32x96xf32> to vector<32x32xf32>
    %13 = arith.truncf %12 : vector<32x32xf32> to vector<32x32xbf16>
    %14 = vector.extract_strided_slice %11 {offsets = [0, 32], sizes = [32, 32], strides = [1, 1]} : vector<32x96xf32> to vector<32x32xf32>
    %15 = arith.truncf %14 : vector<32x32xf32> to vector<32x32xbf16>
    %16 = vector.extract_strided_slice %11 {offsets = [0, 64], sizes = [32, 32], strides = [1, 1]} : vector<32x96xf32> to vector<32x32xf32>
    %17 = arith.truncf %16 : vector<32x32xf32> to vector<32x32xbf16>
    %c0_8 = arith.constant 0 : index
    %c0_9 = arith.constant 0 : index
    %18 = vector.load %arg5[%c0_8, %c0_9] : memref<128x32xbf16, #tpu.memory_space<vmem>>, vector<128x32xbf16>
    %19 = vector.shape_cast %15 : vector<32x32xbf16> to vector<1x32x32xbf16>
    %20 = vector.shape_cast %19 : vector<1x32x32xbf16> to vector<1x32x32xbf16>
    %21 = vector.broadcast %20 : vector<1x32x32xbf16> to vector<4x32x32xbf16>
    %22 = vector.shape_cast %21 : vector<4x32x32xbf16> to vector<128x32xbf16>
    %23 = arith.mulf %22, %18 : vector<128x32xbf16>
    %24 = vector.shape_cast %17 : vector<32x32xbf16> to vector<1x32x32xbf16>
    %25 = vector.shape_cast %24 : vector<1x32x32xbf16> to vector<1x32x32xbf16>
    %26 = vector.broadcast %25 : vector<1x32x32xbf16> to vector<4x32x32xbf16>
    %27 = vector.shape_cast %26 : vector<4x32x32xbf16> to vector<128x32xbf16>
    %28 = arith.mulf %27, %18 : vector<128x32xbf16>
    %cst_10 = arith.constant dense<0.000000e+00> : vector<32x128xf32>
    %29 = tpu.matmul %13, %23, %cst_10 {dimension_numbers = #tpu.dot_dimension_numbers<[1], [1], [0], [0], [0, 0, 1, 0], [], []>} : vector<32x32xbf16>, vector<128x32xbf16>, vector<32x128xf32> -> vector<32x128xf32>
    %c0_11 = arith.constant 0 : index
    %c0_12 = arith.constant 0 : index
    %30 = vector.load %arg4[%c0_11, %c0_12] : memref<32x128xf32, #tpu.memory_space<vmem>>, vector<32x128xf32>
    %31 = arith.addf %29, %30 : vector<32x128xf32>
    %cst_13 = arith.constant dense<0xFF800000> : vector<32xf32>
    %32 = vector.multi_reduction <maximumf>, %31, %cst_13 [1] : vector<32x128xf32> to vector<32xf32>
    %33 = vector.shape_cast %32 : vector<32xf32> to vector<32x1xf32>
    %34 = vector.broadcast %33 : vector<32x1xf32> to vector<32x128xf32>
    %35 = arith.subf %31, %34 : vector<32x128xf32>
    %36 = math.exp %35 : vector<32x128xf32>
    %37 = arith.truncf %36 : vector<32x128xf32> to vector<32x128xbf16>
    %c0_14 = arith.constant 0 : index
    %c0_15 = arith.constant 0 : index
    %38 = vector.load %arg6[%c0_14, %c0_15] : memref<128x128xbf16, #tpu.memory_space<vmem>>, vector<128x128xbf16>
    %cst_16 = arith.constant dense<0.000000e+00> : vector<32x128xf32>
    %39 = tpu.matmul %37, %38, %cst_16 {dimension_numbers = #tpu.dot_dimension_numbers<[1], [0], [0], [1], [0, 0, 1, 1], [], []>} : vector<32x128xbf16>, vector<128x128xbf16>, vector<32x128xf32> -> vector<32x128xf32>
    %cst_17 = arith.constant 1.000000e-30 : f32
    %40 = vector.broadcast %cst_17 : f32 to vector<32x128xf32>
    %41 = arith.maximumf %39, %40 : vector<32x128xf32>
    %42 = tpu.reciprocal %41 {approx = true} : vector<32x128xf32> -> vector<32x128xf32>
    %43 = arith.mulf %36, %42 : vector<32x128xf32>
    %44 = arith.truncf %43 : vector<32x128xf32> to vector<32x128xbf16>
    %cst_18 = arith.constant dense<0.000000e+00> : vector<32x32xf32>
    %45 = tpu.matmul %44, %28, %cst_18 {dimension_numbers = #tpu.dot_dimension_numbers<[1], [0], [0], [1], [0, 0, 1, 1], [], []>} : vector<32x128xbf16>, vector<128x32xbf16>, vector<32x32xf32> -> vector<32x32xf32>
    %c0_19 = arith.constant 0 : index
    %c0_20 = arith.constant 0 : index
    %c0_21 = arith.constant 0 : index
    %46 = vector.load %arg11[%c0_19, %c0_20, %c0_21] : memref<1x6x32xf32, #tpu.memory_space<vmem>>, vector<1x6x32xf32>
    %47 = vector.shape_cast %46 : vector<1x6x32xf32> to vector<6x32xf32>
    %48 = vector.extract_strided_slice %47 {offsets = [0, 0], sizes = [1, 32], strides = [1, 1]} : vector<6x32xf32> to vector<1x32xf32>
    %49 = vector.extract_strided_slice %47 {offsets = [1, 0], sizes = [1, 32], strides = [1, 1]} : vector<6x32xf32> to vector<1x32xf32>
    %50 = vector.extract_strided_slice %47 {offsets = [2, 0], sizes = [1, 32], strides = [1, 1]} : vector<6x32xf32> to vector<1x32xf32>
    %51 = vector.extract_strided_slice %47 {offsets = [3, 0], sizes = [1, 32], strides = [1, 1]} : vector<6x32xf32> to vector<1x32xf32>
    %52 = vector.extract_strided_slice %47 {offsets = [4, 0], sizes = [1, 32], strides = [1, 1]} : vector<6x32xf32> to vector<1x32xf32>
    %53 = vector.extract_strided_slice %47 {offsets = [5, 0], sizes = [1, 32], strides = [1, 1]} : vector<6x32xf32> to vector<1x32xf32>
    %54 = arith.truncf %45 : vector<32x32xf32> to vector<32x32xbf16>
    %c0_22 = arith.constant 0 : index
    %c0_23 = arith.constant 0 : index
    %c0_24 = arith.constant 0 : index
    %55 = vector.load %arg10[%c0_22, %c0_23, %c0_24] : memref<1x32x32xbf16, #tpu.memory_space<vmem>>, vector<1x32x32xbf16>
    %56 = vector.shape_cast %55 : vector<1x32x32xbf16> to vector<32x32xbf16>
    %cst_25 = arith.constant dense<0.000000e+00> : vector<32x32xf32>
    %57 = tpu.matmul %54, %56, %cst_25 {dimension_numbers = #tpu.dot_dimension_numbers<[1], [0], [0], [1], [0, 0, 1, 1], [], []>} : vector<32x32xbf16>, vector<32x32xbf16>, vector<32x32xf32> -> vector<32x32xf32>
    %58 = vector.broadcast %48 : vector<1x32xf32> to vector<32x32xf32>
    %59 = arith.addf %57, %58 : vector<32x32xf32>
    %60 = arith.addf %3, %59 : vector<32x32xf32>
    %cst_26 = arith.constant dense<0.000000e+00> : vector<32xf32>
    %61 = vector.multi_reduction <add>, %60, %cst_26 [1] : vector<32x32xf32> to vector<32xf32>
    %62 = vector.shape_cast %61 : vector<32xf32> to vector<32x1xf32>
    %cst_27 = arith.constant 3.200000e+01 : f32
    %63 = vector.broadcast %cst_27 : f32 to vector<32x1xf32>
    %64 = arith.divf %62, %63 : vector<32x1xf32>
    %65 = vector.broadcast %64 : vector<32x1xf32> to vector<32x32xf32>
    %66 = arith.subf %60, %65 : vector<32x32xf32>
    %67 = arith.mulf %66, %66 : vector<32x32xf32>
    %cst_28 = arith.constant dense<0.000000e+00> : vector<32xf32>
    %68 = vector.multi_reduction <add>, %67, %cst_28 [1] : vector<32x32xf32> to vector<32xf32>
    %69 = vector.shape_cast %68 : vector<32xf32> to vector<32x1xf32>
    %cst_29 = arith.constant 3.200000e+01 : f32
    %70 = vector.broadcast %cst_29 : f32 to vector<32x1xf32>
    %71 = arith.divf %69, %70 : vector<32x1xf32>
    %72 = vector.broadcast %64 : vector<32x1xf32> to vector<32x32xf32>
    %73 = arith.subf %60, %72 : vector<32x32xf32>
    %cst_30 = arith.constant 9.99999974E-6 : f32
    %74 = vector.broadcast %cst_30 : f32 to vector<32x1xf32>
    %75 = arith.addf %71, %74 : vector<32x1xf32>
    %76 = math.rsqrt %75 : vector<32x1xf32>
    %77 = vector.broadcast %76 : vector<32x1xf32> to vector<32x32xf32>
    %78 = arith.mulf %73, %77 : vector<32x32xf32>
    %79 = vector.broadcast %49 : vector<1x32xf32> to vector<32x32xf32>
    %80 = arith.mulf %78, %79 : vector<32x32xf32>
    %81 = vector.broadcast %50 : vector<1x32xf32> to vector<32x32xf32>
    %82 = arith.addf %80, %81 : vector<32x32xf32>
    %83 = arith.truncf %82 : vector<32x32xf32> to vector<32x32xbf16>
    %84 = vector.broadcast %51 : vector<1x32xf32> to vector<32x32xf32>
    %85 = arith.addf %82, %84 : vector<32x32xf32>
    %c0_31 = arith.constant 0 : index
    %c0_32 = arith.constant 0 : index
    %c0_33 = arith.constant 0 : index
    %86 = vector.load %arg12[%c0_31, %c0_32, %c0_33] : memref<1x32x2048xbf16, #tpu.memory_space<vmem>>, vector<1x32x512xbf16>
    %87 = vector.shape_cast %86 : vector<1x32x512xbf16> to vector<32x512xbf16>
    %cst_34 = arith.constant dense<0.000000e+00> : vector<32x512xf32>
    %88 = tpu.matmul %83, %87, %cst_34 {dimension_numbers = #tpu.dot_dimension_numbers<[1], [0], [0], [1], [0, 0, 1, 1], [], []>} : vector<32x32xbf16>, vector<32x512xbf16>, vector<32x512xf32> -> vector<32x512xf32>
    %c0_35 = arith.constant 0 : index
    %c0_36 = arith.constant 0 : index
    %c0_37 = arith.constant 0 : index
    %89 = vector.load %arg13[%c0_35, %c0_36, %c0_37] : memref<1x1x2048xf32, #tpu.memory_space<vmem>>, vector<1x1x512xf32>
    %90 = vector.shape_cast %89 : vector<1x1x512xf32> to vector<1x512xf32>
    %91 = vector.broadcast %90 : vector<1x512xf32> to vector<32x512xf32>
    %92 = arith.addf %88, %91 : vector<32x512xf32>
    %cst_38 = arith.constant 0.000000e+00 : f32
    %93 = vector.broadcast %cst_38 : f32 to vector<32x512xf32>
    %94 = arith.maximumf %92, %93 : vector<32x512xf32>
    %95 = arith.truncf %94 : vector<32x512xf32> to vector<32x512xbf16>
    %c0_39 = arith.constant 0 : index
    %c0_40 = arith.constant 0 : index
    %c0_41 = arith.constant 0 : index
    %96 = vector.load %arg14[%c0_39, %c0_40, %c0_41] : memref<1x32x2048xbf16, #tpu.memory_space<vmem>>, vector<1x32x512xbf16>
    %97 = vector.shape_cast %96 : vector<1x32x512xbf16> to vector<32x512xbf16>
    %cst_42 = arith.constant dense<0.000000e+00> : vector<32x32xf32>
    %98 = tpu.matmul %95, %97, %cst_42 {dimension_numbers = #tpu.dot_dimension_numbers<[1], [1], [0], [0], [0, 0, 1, 0], [], []>} : vector<32x512xbf16>, vector<32x512xbf16>, vector<32x32xf32> -> vector<32x32xf32>
    %99 = arith.addf %85, %98 : vector<32x32xf32>
    %c0_43 = arith.constant 0 : index
    %c0_44 = arith.constant 0 : index
    %c512 = arith.constant 512 : index
    %100 = vector.load %arg12[%c0_43, %c0_44, %c512] : memref<1x32x2048xbf16, #tpu.memory_space<vmem>>, vector<1x32x512xbf16>
    %101 = vector.shape_cast %100 : vector<1x32x512xbf16> to vector<32x512xbf16>
    %cst_45 = arith.constant dense<0.000000e+00> : vector<32x512xf32>
    %102 = tpu.matmul %83, %101, %cst_45 {dimension_numbers = #tpu.dot_dimension_numbers<[1], [0], [0], [1], [0, 0, 1, 1], [], []>} : vector<32x32xbf16>, vector<32x512xbf16>, vector<32x512xf32> -> vector<32x512xf32>
    %c0_46 = arith.constant 0 : index
    %c0_47 = arith.constant 0 : index
    %c512_48 = arith.constant 512 : index
    %103 = vector.load %arg13[%c0_46, %c0_47, %c512_48] : memref<1x1x2048xf32, #tpu.memory_space<vmem>>, vector<1x1x512xf32>
    %104 = vector.shape_cast %103 : vector<1x1x512xf32> to vector<1x512xf32>
    %105 = vector.broadcast %104 : vector<1x512xf32> to vector<32x512xf32>
    %106 = arith.addf %102, %105 : vector<32x512xf32>
    %cst_49 = arith.constant 0.000000e+00 : f32
    %107 = vector.broadcast %cst_49 : f32 to vector<32x512xf32>
    %108 = arith.maximumf %106, %107 : vector<32x512xf32>
    %109 = arith.truncf %108 : vector<32x512xf32> to vector<32x512xbf16>
    %c0_50 = arith.constant 0 : index
    %c0_51 = arith.constant 0 : index
    %c512_52 = arith.constant 512 : index
    %110 = vector.load %arg14[%c0_50, %c0_51, %c512_52] : memref<1x32x2048xbf16, #tpu.memory_space<vmem>>, vector<1x32x512xbf16>
    %111 = vector.shape_cast %110 : vector<1x32x512xbf16> to vector<32x512xbf16>
    %cst_53 = arith.constant dense<0.000000e+00> : vector<32x32xf32>
    %112 = tpu.matmul %109, %111, %cst_53 {dimension_numbers = #tpu.dot_dimension_numbers<[1], [1], [0], [0], [0, 0, 1, 0], [], []>} : vector<32x512xbf16>, vector<32x512xbf16>, vector<32x32xf32> -> vector<32x32xf32>
    %113 = arith.addf %99, %112 : vector<32x32xf32>
    %c0_54 = arith.constant 0 : index
    %c0_55 = arith.constant 0 : index
    %c1024 = arith.constant 1024 : index
    %114 = vector.load %arg12[%c0_54, %c0_55, %c1024] : memref<1x32x2048xbf16, #tpu.memory_space<vmem>>, vector<1x32x512xbf16>
    %115 = vector.shape_cast %114 : vector<1x32x512xbf16> to vector<32x512xbf16>
    %cst_56 = arith.constant dense<0.000000e+00> : vector<32x512xf32>
    %116 = tpu.matmul %83, %115, %cst_56 {dimension_numbers = #tpu.dot_dimension_numbers<[1], [0], [0], [1], [0, 0, 1, 1], [], []>} : vector<32x32xbf16>, vector<32x512xbf16>, vector<32x512xf32> -> vector<32x512xf32>
    %c0_57 = arith.constant 0 : index
    %c0_58 = arith.constant 0 : index
    %c1024_59 = arith.constant 1024 : index
    %117 = vector.load %arg13[%c0_57, %c0_58, %c1024_59] : memref<1x1x2048xf32, #tpu.memory_space<vmem>>, vector<1x1x512xf32>
    %118 = vector.shape_cast %117 : vector<1x1x512xf32> to vector<1x512xf32>
    %119 = vector.broadcast %118 : vector<1x512xf32> to vector<32x512xf32>
    %120 = arith.addf %116, %119 : vector<32x512xf32>
    %cst_60 = arith.constant 0.000000e+00 : f32
    %121 = vector.broadcast %cst_60 : f32 to vector<32x512xf32>
    %122 = arith.maximumf %120, %121 : vector<32x512xf32>
    %123 = arith.truncf %122 : vector<32x512xf32> to vector<32x512xbf16>
    %c0_61 = arith.constant 0 : index
    %c0_62 = arith.constant 0 : index
    %c1024_63 = arith.constant 1024 : index
    %124 = vector.load %arg14[%c0_61, %c0_62, %c1024_63] : memref<1x32x2048xbf16, #tpu.memory_space<vmem>>, vector<1x32x512xbf16>
    %125 = vector.shape_cast %124 : vector<1x32x512xbf16> to vector<32x512xbf16>
    %cst_64 = arith.constant dense<0.000000e+00> : vector<32x32xf32>
    %126 = tpu.matmul %123, %125, %cst_64 {dimension_numbers = #tpu.dot_dimension_numbers<[1], [1], [0], [0], [0, 0, 1, 0], [], []>} : vector<32x512xbf16>, vector<32x512xbf16>, vector<32x32xf32> -> vector<32x32xf32>
    %127 = arith.addf %113, %126 : vector<32x32xf32>
    %c0_65 = arith.constant 0 : index
    %c0_66 = arith.constant 0 : index
    %c1536 = arith.constant 1536 : index
    %128 = vector.load %arg12[%c0_65, %c0_66, %c1536] : memref<1x32x2048xbf16, #tpu.memory_space<vmem>>, vector<1x32x512xbf16>
    %129 = vector.shape_cast %128 : vector<1x32x512xbf16> to vector<32x512xbf16>
    %cst_67 = arith.constant dense<0.000000e+00> : vector<32x512xf32>
    %130 = tpu.matmul %83, %129, %cst_67 {dimension_numbers = #tpu.dot_dimension_numbers<[1], [0], [0], [1], [0, 0, 1, 1], [], []>} : vector<32x32xbf16>, vector<32x512xbf16>, vector<32x512xf32> -> vector<32x512xf32>
    %c0_68 = arith.constant 0 : index
    %c0_69 = arith.constant 0 : index
    %c1536_70 = arith.constant 1536 : index
    %131 = vector.load %arg13[%c0_68, %c0_69, %c1536_70] : memref<1x1x2048xf32, #tpu.memory_space<vmem>>, vector<1x1x512xf32>
    %132 = vector.shape_cast %131 : vector<1x1x512xf32> to vector<1x512xf32>
    %133 = vector.broadcast %132 : vector<1x512xf32> to vector<32x512xf32>
    %134 = arith.addf %130, %133 : vector<32x512xf32>
    %cst_71 = arith.constant 0.000000e+00 : f32
    %135 = vector.broadcast %cst_71 : f32 to vector<32x512xf32>
    %136 = arith.maximumf %134, %135 : vector<32x512xf32>
    %137 = arith.truncf %136 : vector<32x512xf32> to vector<32x512xbf16>
    %c0_72 = arith.constant 0 : index
    %c0_73 = arith.constant 0 : index
    %c1536_74 = arith.constant 1536 : index
    %138 = vector.load %arg14[%c0_72, %c0_73, %c1536_74] : memref<1x32x2048xbf16, #tpu.memory_space<vmem>>, vector<1x32x512xbf16>
    %139 = vector.shape_cast %138 : vector<1x32x512xbf16> to vector<32x512xbf16>
    %cst_75 = arith.constant dense<0.000000e+00> : vector<32x32xf32>
    %140 = tpu.matmul %137, %139, %cst_75 {dimension_numbers = #tpu.dot_dimension_numbers<[1], [1], [0], [0], [0, 0, 1, 0], [], []>} : vector<32x512xbf16>, vector<32x512xbf16>, vector<32x32xf32> -> vector<32x32xf32>
    %141 = arith.addf %127, %140 : vector<32x32xf32>
    %cst_76 = arith.constant dense<0.000000e+00> : vector<32xf32>
    %142 = vector.multi_reduction <add>, %141, %cst_76 [1] : vector<32x32xf32> to vector<32xf32>
    %143 = vector.shape_cast %142 : vector<32xf32> to vector<32x1xf32>
    %cst_77 = arith.constant 3.200000e+01 : f32
    %144 = vector.broadcast %cst_77 : f32 to vector<32x1xf32>
    %145 = arith.divf %143, %144 : vector<32x1xf32>
    %146 = vector.broadcast %145 : vector<32x1xf32> to vector<32x32xf32>
    %147 = arith.subf %141, %146 : vector<32x32xf32>
    %148 = arith.mulf %147, %147 : vector<32x32xf32>
    %cst_78 = arith.constant dense<0.000000e+00> : vector<32xf32>
    %149 = vector.multi_reduction <add>, %148, %cst_78 [1] : vector<32x32xf32> to vector<32xf32>
    %150 = vector.shape_cast %149 : vector<32xf32> to vector<32x1xf32>
    %cst_79 = arith.constant 3.200000e+01 : f32
    %151 = vector.broadcast %cst_79 : f32 to vector<32x1xf32>
    %152 = arith.divf %150, %151 : vector<32x1xf32>
    %153 = vector.broadcast %145 : vector<32x1xf32> to vector<32x32xf32>
    %154 = arith.subf %141, %153 : vector<32x32xf32>
    %cst_80 = arith.constant 9.99999974E-6 : f32
    %155 = vector.broadcast %cst_80 : f32 to vector<32x1xf32>
    %156 = arith.addf %152, %155 : vector<32x1xf32>
    %157 = math.rsqrt %156 : vector<32x1xf32>
    %158 = vector.broadcast %157 : vector<32x1xf32> to vector<32x32xf32>
    %159 = arith.mulf %154, %158 : vector<32x32xf32>
    %160 = vector.broadcast %52 : vector<1x32xf32> to vector<32x32xf32>
    %161 = arith.mulf %159, %160 : vector<32x32xf32>
    %162 = vector.broadcast %53 : vector<1x32xf32> to vector<32x32xf32>
    %163 = arith.addf %161, %162 : vector<32x32xf32>
    %c0_81 = arith.constant 0 : index
    %c0_82 = arith.constant 0 : index
    %164 = vector.load %arg16[%c0_81, %c0_82] : memref<32x32xf32, #tpu.memory_space<vmem>>, vector<32x32xf32>
    tpu.vector_store %arg16[%c0_81, %c0_82], %163 {strides = array<i32>} : memref<32x32xf32, #tpu.memory_space<vmem>>, vector<32x32xf32>,
    %c1_i32 = arith.constant 1 : i32
    %165 = arith.cmpi eq, %arg0, %c1_i32 : i32
    %166 = arith.extui %165 : i1 to i32
    %c0_i32_83 = arith.constant 0 : i32
    %167 = arith.cmpi ne, %166, %c0_i32_83 : i32
    scf.if %167 {
      %c0_84 = arith.constant 0 : index
      %c0_85 = arith.constant 0 : index
      %168 = vector.load %arg7[%c0_84, %c0_85] : memref<4x32xf32, #tpu.memory_space<vmem>>, vector<4x32xf32>
      %cst_86 = arith.constant dense<0.000000e+00> : vector<4x32xf32>
      %169 = tpu.matmul %168, %163, %cst_86 {dimension_numbers = #tpu.dot_dimension_numbers<[1], [0], [0], [1], [0, 0, 1, 1], [], []>} : vector<4x32xf32>, vector<32x32xf32>, vector<4x32xf32> -> vector<4x32xf32>
      %170 = arith.mulf %169, %169 : vector<4x32xf32>
      %cst_87 = arith.constant dense<0.000000e+00> : vector<4xf32>
      %171 = vector.multi_reduction <add>, %170, %cst_87 [1] : vector<4x32xf32> to vector<4xf32>
      %172 = vector.shape_cast %171 : vector<4xf32> to vector<4x1xf32>
      %173 = math.sqrt %172 : vector<4x1xf32>
      %cst_88 = arith.constant 9.99999993E-9 : f32
      %174 = vector.broadcast %cst_88 : f32 to vector<4x1xf32>
      %175 = arith.addf %173, %174 : vector<4x1xf32>
      %176 = tpu.reciprocal %175 {approx = true} : vector<4x1xf32> -> vector<4x1xf32>
      %177 = vector.broadcast %176 : vector<4x1xf32> to vector<4x32xf32>
      %178 = arith.mulf %169, %177 : vector<4x32xf32>
      %c0_89 = arith.constant 0 : index
      %c0_90 = arith.constant 0 : index
      %179 = vector.load %arg15[%c0_89, %c0_90] : memref<4x32xf32, #tpu.memory_space<vmem>>, vector<4x32xf32>
      tpu.vector_store %arg15[%c0_89, %c0_90], %178 {strides = array<i32>} : memref<4x32xf32, #tpu.memory_space<vmem>>, vector<4x32xf32>,
    } else {
    }
    return
  }
  func.func @transform_0(%arg0: i32) -> (i32, i32) {
    %c0_i32 = arith.constant 0 : i32
    %c0_i32_0 = arith.constant 0 : i32
    %c0_i32_1 = arith.constant 0 : i32
    return %c0_i32, %c0_i32_0 : i32, i32
  }
  func.func @transform_1(%arg0: i32) -> (i32, i32) {
    %c0_i32 = arith.constant 0 : i32
    %c0_i32_0 = arith.constant 0 : i32
    %c0_i32_1 = arith.constant 0 : i32
    return %c0_i32, %c0_i32_0 : i32, i32
  }
  func.func @transform_2(%arg0: i32) -> (i32, i32) {
    %c0_i32 = arith.constant 0 : i32
    %c0_i32_0 = arith.constant 0 : i32
    %c0_i32_1 = arith.constant 0 : i32
    return %c0_i32, %c0_i32_0 : i32, i32
  }
  func.func @transform_3(%arg0: i32) -> (i32, i32) {
    %c0_i32 = arith.constant 0 : i32
    %c0_i32_0 = arith.constant 0 : i32
    %c0_i32_1 = arith.constant 0 : i32
    return %c0_i32, %c0_i32_0 : i32, i32
  }
  func.func @transform_4(%arg0: i32) -> (i32, i32) {
    %c0_i32 = arith.constant 0 : i32
    %c0_i32_0 = arith.constant 0 : i32
    %c0_i32_1 = arith.constant 0 : i32
    return %c0_i32, %c0_i32_0 : i32, i32
  }
  func.func @transform_5(%arg0: i32) -> (i32, i32) {
    %c0_i32 = arith.constant 0 : i32
    %c0_i32_0 = arith.constant 0 : i32
    %c0_i32_1 = arith.constant 0 : i32
    return %c0_i32, %c0_i32_0 : i32, i32
  }
  func.func @transform_6(%arg0: i32) -> (i32, i32) {
    %c0_i32 = arith.constant 0 : i32
    %c0_i32_0 = arith.constant 0 : i32
    %c0_i32_1 = arith.constant 0 : i32
    return %c0_i32, %c0_i32_0 : i32, i32
  }
  func.func @transform_7(%arg0: i32) -> (i32, i32, i32) {
    %c0_i32 = arith.constant 0 : i32
    %c0_i32_0 = arith.constant 0 : i32
    %c0_i32_1 = arith.constant 0 : i32
    return %arg0, %c0_i32, %c0_i32_0 : i32, i32, i32
  }
  func.func @transform_8(%arg0: i32) -> (i32, i32, i32) {
    %c0_i32 = arith.constant 0 : i32
    %c0_i32_0 = arith.constant 0 : i32
    %c0_i32_1 = arith.constant 0 : i32
    return %arg0, %c0_i32, %c0_i32_0 : i32, i32, i32
  }
  func.func @transform_9(%arg0: i32) -> (i32, i32, i32) {
    %c0_i32 = arith.constant 0 : i32
    %c0_i32_0 = arith.constant 0 : i32
    %c0_i32_1 = arith.constant 0 : i32
    return %arg0, %c0_i32, %c0_i32_0 : i32, i32, i32
  }
  func.func @transform_10(%arg0: i32) -> (i32, i32, i32) {
    %c0_i32 = arith.constant 0 : i32
    %c0_i32_0 = arith.constant 0 : i32
    %c0_i32_1 = arith.constant 0 : i32
    return %arg0, %c0_i32, %c0_i32_0 : i32, i32, i32
  }
  func.func @transform_11(%arg0: i32) -> (i32, i32, i32) {
    %c0_i32 = arith.constant 0 : i32
    %c0_i32_0 = arith.constant 0 : i32
    %c0_i32_1 = arith.constant 0 : i32
    return %arg0, %c0_i32, %c0_i32_0 : i32, i32, i32
  }
  func.func @transform_12(%arg0: i32) -> (i32, i32, i32) {
    %c0_i32 = arith.constant 0 : i32
    %c0_i32_0 = arith.constant 0 : i32
    %c0_i32_1 = arith.constant 0 : i32
    return %arg0, %c0_i32, %c0_i32_0 : i32, i32, i32
  }
  func.func @transform_13(%arg0: i32) -> (i32, i32, i32) {
    %c0_i32 = arith.constant 0 : i32
    %c0_i32_0 = arith.constant 0 : i32
    %c0_i32_1 = arith.constant 0 : i32
    return %arg0, %c0_i32, %c0_i32_0 : i32, i32, i32
  }
  func.func @transform_14(%arg0: i32) -> (i32, i32) {
    %c0_i32 = arith.constant 0 : i32
    %c0_i32_0 = arith.constant 0 : i32
    %c0_i32_1 = arith.constant 0 : i32
    return %c0_i32, %c0_i32_0 : i32, i32
  }
}

</mosaic_0001>

<bundles_post_ra>
// kernel: tile.9
= control target key start
LH: loop header
LB: loop body
LE: loop exit
PB: predicated region body
PF: predicated region fallthrough
CT: control target
= control target key end

     0   :  { %vm162_vm0 = vcmask 1047556   ;;  %s398_s10 = smov 96   ;;  %vm164_vm1 = vcmask 261120   ;;  %s400_s21 = smov 32   ;;  %vm201_vm2 = vcmask 1048320   ;;  %vm244_vm3 = vcmask 785920   ;;  %s579_s0 = inlined_call_operand.vmem [shape: f32[32,4,32], index: 0, kind: input, shape index: {}]   ;;  %s580_s1 = inlined_call_operand.vmem [shape: f32[32,128], index: 1, kind: output, shape index: {}]  }
   0x1   :  { %v376_v0 = vld [vmem:[%s579_s0 + $0x1c] sm:$0xf]  ;;  %v377_v1 = vld [vmem:[%s579_s0 + $0x18] sm:$0xf]  ;;  %v378_v2 = vld [vmem:[%s579_s0 + $0x14] sm:$0xf] }
   0x2   :  { %128 = vst [vmem:[#allocation0 + $0x38] sm:$0xf] %v376_v0  ;;  %133 = vst [vmem:[#allocation0 + $0x30] sm:$0xf] %v377_v1  ;;  %v379_v3 = vld [vmem:[%s579_s0 + $0x10] sm:$0xf] }
   0x3   :  { %138 = vst [vmem:[#allocation0 + $0x28] sm:$0xf] %v378_v2  ;;  %v380_v4 = vld [vmem:[%s579_s0 + $0xc] sm:$0xf]  ;;  %v381_v5 = vld [vmem:[%s579_s0 + $0x8] sm:$0xf] }
   0x4   :  { %143 = vst [vmem:[#allocation0 + $0x20] sm:$0xf] %v379_v3  ;;  %148 = vst [vmem:[#allocation0 + $0x18] sm:$0xf] %v380_v4  ;;  %v382_v6 = vld [vmem:[%s579_s0 + $0x4] sm:$0xf] }
   0x5   :  { %153 = vst [vmem:[#allocation0 + $0x10] sm:$0xf] %v381_v5  ;;  %v158_v7 = vld [vmem:[%s579_s0] sm:$0xf]  ;;  %157 = vst [vmem:[#allocation0 + $0x8] sm:$0xf] %v382_v6 }
   0x6   :  { %159 = vst [vmem:[#allocation0] sm:$0xf] %v158_v7  ;;  %v360_v8 = vld [vmem:[%s579_s0 + $0x5c] sm:$0xf]  ;;  %v361_v9 = vld [vmem:[%s579_s0 + $0x58] sm:$0xf] }
   0x7   :  { %v362_v10 = vld [vmem:[%s579_s0 + $0x54] sm:$0xf]  ;;  %48 = vst [vmem:[#allocation0 + $0xb8] sm:$0xf] %v360_v8  ;;  %53 = vst [vmem:[#allocation0 + $0xb0] sm:$0xf] %v361_v9 }
   0x8   :  { %58 = vst [vmem:[#allocation0 + $0xa8] sm:$0xf] %v362_v10  ;;  %v363_v11 = vld [vmem:[%s579_s0 + $0x50] sm:$0xf]  ;;  %v364_v12 = vld [vmem:[%s579_s0 + $0x4c] sm:$0xf] }
   0x9   :  { %v365_v13 = vld [vmem:[%s579_s0 + $0x48] sm:$0xf]  ;;  %63 = vst [vmem:[#allocation0 + $0xa0] sm:$0xf] %v363_v11  ;;  %68 = vst [vmem:[#allocation0 + $0x98] sm:$0xf] %v364_v12 }
   0xa   :  { %73 = vst [vmem:[#allocation0 + $0x90] sm:$0xf] %v365_v13  ;;  %v366_v14 = vld [vmem:[%s579_s0 + $0x44] sm:$0xf]  ;;  %v367_v15 = vld [vmem:[%s579_s0 + $0x40] sm:$0xf] }
   0xb   :  { %v368_v16 = vld [vmem:[%s579_s0 + $0x3c] sm:$0xf]  ;;  %78 = vst [vmem:[#allocation0 + $0x88] sm:$0xf] %v366_v14  ;;  %83 = vst [vmem:[#allocation0 + $0x80] sm:$0xf] %v367_v15 }
   0xc   :  { %88 = vst [vmem:[#allocation0 + $0x78] sm:$0xf] %v368_v16  ;;  %v369_v17 = vld [vmem:[%s579_s0 + $0x38] sm:$0xf]  ;;  %v370_v18 = vld [vmem:[%s579_s0 + $0x34] sm:$0xf] }
   0xd   :  { %v371_v19 = vld [vmem:[%s579_s0 + $0x30] sm:$0xf]  ;;  %93 = vst [vmem:[#allocation0 + $0x70] sm:$0xf] %v369_v17  ;;  %98 = vst [vmem:[#allocation0 + $0x68] sm:$0xf] %v370_v18 }
   0xe   :  { %103 = vst [vmem:[#allocation0 + $0x60] sm:$0xf] %v371_v19  ;;  %v372_v20 = vld [vmem:[%s579_s0 + $0x2c] sm:$0xf]  ;;  %v373_v21 = vld [vmem:[%s579_s0 + $0x28] sm:$0xf] }
   0xf   :  { %v374_v22 = vld [vmem:[%s579_s0 + $0x24] sm:$0xf]  ;;  %108 = vst [vmem:[#allocation0 + $0x58] sm:$0xf] %v372_v20  ;;  %113 = vst [vmem:[#allocation0 + $0x50] sm:$0xf] %v373_v21 }
  0x10   :  { %118 = vst [vmem:[#allocation0 + $0x48] sm:$0xf] %v374_v22  ;;  %v375_v23 = vld [vmem:[%s579_s0 + $0x20] sm:$0xf]  ;;  %v352_v24 = vld [vmem:[%s579_s0 + $0x7c] sm:$0xf] }
  0x11   :  { %v353_v25 = vld [vmem:[%s579_s0 + $0x78] sm:$0xf]  ;;  %123 = vst [vmem:[#allocation0 + $0x40] sm:$0xf] %v375_v23  ;;  %8 = vst [vmem:[#allocation0 + $0xf8] sm:$0xf] %v352_v24 }
  0x12   :  { %v196_v26 = vld [vmem:[#allocation0 + $0x3] ss:$8 sm:$0xf0]   ;;  %13 = vst [vmem:[#allocation0 + $0xf0] sm:$0xf] %v353_v25  ;;  %vm287_vm4 = vcmask 523520  }
  0x13   :  { %v354_v27 = vld [vmem:[%s579_s0 + $0x74] sm:$0xf]  ;;  %v194_v28 = vld [vmem:[#allocation0 + $0x3] ss:$8 sm:$0xf]  }
  0x14   :  { %18 = vst [vmem:[#allocation0 + $0xe8] sm:$0xf] %v354_v27  ;;  %v355_v29 = vld [vmem:[%s579_s0 + $0x70] sm:$0xf]  ;;  %v198_v30 = vsel %vm162_vm0, %v196_v26, %v194_v28  ;;  %v356_v31 = vld [vmem:[%s579_s0 + $0x6c] sm:$0xf] }
  0x15   :  { %23 = vst [vmem:[#allocation0 + $0xe0] sm:$0xf] %v355_v29  ;;  %v357_v32 = vld [vmem:[%s579_s0 + $0x68] sm:$0xf]  ;;  %v358_v33 = vld [vmem:[%s579_s0 + $0x64] sm:$0xf]  ;;  %199 = vrot.lane.b32.xlu0 %v198_v30, %s398_s10 }
  0x16   :  { %v217_v34 = vld [vmem:[#allocation0 + $0x83] ss:$8 sm:$0xf0]   ;;  %28 = vst [vmem:[#allocation0 + $0xd8] sm:$0xf] %v356_v31 }
  0x17   :  { %33 = vst [vmem:[#allocation0 + $0xd0] sm:$0xf] %v357_v32  ;;  %38 = vst [vmem:[#allocation0 + $0xc8] sm:$0xf] %v358_v33  ;;  %v359_v35 = vld [vmem:[%s579_s0 + $0x60] sm:$0xf] }
  0x18   :  { %v215_v36 = vld [vmem:[#allocation0 + $0x83] ss:$8 sm:$0xf]   ;;  %43 = vst [vmem:[#allocation0 + $0xc0] sm:$0xf] %v359_v35  ;;  %s399_s0 = smov 64  }
  0x19   :  { %v219_v37 = vsel %vm162_vm0, %v217_v34, %v215_v36  ;;  %v206_v38 = vld [vmem:[#allocation0 + $0x43] ss:$8 sm:$0xf0]   ;;  %v237_v39 = vld [vmem:[#allocation0 + $0x2] ss:$8 sm:$0xf]  }
  0x1a   :  { %220 = vrot.lane.b32.xlu1 %v219_v37, %s398_s10  ;;  %v204_v40 = vld [vmem:[#allocation0 + $0x43] ss:$8 sm:$0xf]   ;;  %v239_v41 = vld [vmem:[#allocation0 + $0x2] ss:$8 sm:$0xf0]  }
  0x1b   :  { %v208_v42 = vsel %vm162_vm0, %v206_v38, %v204_v40  ;;  %v249_v44 = vld [vmem:[#allocation0 + $0x42] ss:$8 sm:$0xf0]   ;;  %v241_v45 = vsel %vm162_vm0, %v239_v41, %v237_v39  ;;  %v280_v52 = vld [vmem:[#allocation0 + $0x1] ss:$8 sm:$0xf]  }
  0x1c   :  { %209 = vrot.lane.b32.xlu0 %v208_v42, %s398_s10  ;;  %v228_v43 = vld [vmem:[#allocation0 + $0xc3] ss:$8 sm:$0xf0]   ;;  %v247_v46 = vld [vmem:[#allocation0 + $0x42] ss:$8 sm:$0xf]  }
  0x1d   :  { %v258_v47 = vld [vmem:[#allocation0 + $0x82] ss:$8 sm:$0xf]   ;;  %v251_v53 = vsel %vm162_vm0, %v249_v44, %v247_v46  ;;  %v282_v55 = vld [vmem:[#allocation0 + $0x1] ss:$8 sm:$0xf0]  }
  0x1e   :  { %v260_v49 = vld [vmem:[#allocation0 + $0x82] ss:$8 sm:$0xf0]   ;;  %v160_v56 = vld [vmem:[#allocation0] ss:$8 sm:$0xf]   ;;  %v284_v4 = vsel %vm162_vm0, %v282_v55, %v280_v52 }
  0x1f   :  { %v226_v48 = vld [vmem:[#allocation0 + $0xc3] ss:$8 sm:$0xf]   ;;  %v271_v51 = vld [vmem:[#allocation0 + $0xc2] ss:$8 sm:$0xf0]   ;;  %v262_v54 = vsel %vm162_vm0, %v260_v49, %v258_v47 }
  0x20   :  { %v230_v50 = vsel %vm162_vm0, %v228_v43, %v226_v48  ;;  %242 = vrot.lane.b32.xlu0 %v241_v45, %s399_s0  ;;  %v269_v57 = vld [vmem:[#allocation0 + $0xc2] ss:$8 sm:$0xf]   ;;  %v161_v58 = vld [vmem:[#allocation0] ss:$8 sm:$0xf0]  }
  0x21   :  { %231 = vrot.lane.b32.xlu1 %v230_v50, %s398_s10  ;;  %v163_v59 = vsel %vm162_vm0, %v161_v58, %v160_v56  ;;  %v176_v60 = vld [vmem:[#allocation0 + $0x80] ss:$8 sm:$0xf]   ;;  %v290_v62 = vld [vmem:[#allocation0 + $0x41] ss:$8 sm:$0xf]   ;;  %v273_v3 = vsel %vm162_vm0, %v271_v51, %v269_v57 }
  0x22   :  { %v178_v61 = vld [vmem:[#allocation0 + $0x80] ss:$8 sm:$0xf0]   ;;  %v292_v63 = vld [vmem:[#allocation0 + $0x41] ss:$8 sm:$0xf0]  }
  0x23   :  { %165 = vst.msk [vmem:[%s580_s1] sm:$0xff] %vm164_vm1, %v163_v59   ;;  %v180_v0 = vsel %vm162_vm0, %v178_v61, %v176_v60  ;;  %v167_v1 = vld [vmem:[#allocation0 + $0x40] ss:$8 sm:$0xf]   ;;  %v294_v11 = vsel %vm162_vm0, %v292_v63, %v290_v62 }
  0x24   :  { %263 = vrot.lane.b32.xlu0 %v262_v54, %s399_s0  ;;  %v169_v2 = vld [vmem:[#allocation0 + $0x40] ss:$8 sm:$0xf0]   ;;  %384 = vst.msk [vmem:[%s580_s1 + $0x10] sm:$0xff] %vm164_vm1, %v180_v0  }
  0x25   :  { %252 = vrot.lane.b32.xlu1 %v251_v53, %s399_s0  ;;  %v171_v5 = vsel %vm162_vm0, %v169_v2, %v167_v1  ;;  %v185_v6 = vld [vmem:[#allocation0 + $0xc0] ss:$8 sm:$0xf]   ;;  %v301_v8 = vld [vmem:[#allocation0 + $0x81] ss:$8 sm:$0xf]  }
  0x26   :  { %v187_v7 = vld [vmem:[#allocation0 + $0xc0] ss:$8 sm:$0xf0]   ;;  %v303_v9 = vld [vmem:[#allocation0 + $0x81] ss:$8 sm:$0xf0]  }
  0x27   :  { %383 = vst.msk [vmem:[%s580_s1 + $0x8] sm:$0xff] %vm164_vm1, %v171_v5   ;;  %v189_v10 = vsel %vm162_vm0, %v187_v7, %v185_v6  ;;  %v305_v12 = vsel %vm162_vm0, %v303_v9, %v301_v8  ;;  %v312_v13 = vld [vmem:[#allocation0 + $0xc1] ss:$8 sm:$0xf]  }
  0x28   :  { %385 = vst.msk [vmem:[%s580_s1 + $0x18] sm:$0xff] %vm164_vm1, %v189_v10   ;;  %285 = vrot.lane.b32.xlu0 %v284_v4, %s400_s21  ;;  %v314_v14 = vld [vmem:[#allocation0 + $0xc1] ss:$8 sm:$0xf0]  }
  0x29   :  { %274 = vrot.lane.b32.xlu1 %v273_v3, %s399_s0  ;;  %v316_v15 = vsel %vm162_vm0, %v314_v14, %v312_v13 }
  0x2c   :  { %306 = vrot.lane.b32.xlu0 %v305_v12, %s400_s21 }
  0x2d   :  { %295 = vrot.lane.b32.xlu1 %v294_v11, %s400_s21 }
  0x31   :  { %317 = vrot.lane.b32.xlu1 %v316_v15, %s400_s21 }
  0x87   :  { %v200_v16 = vpop.permute.xlu0 %199  }
  0x88   :  { %202 = vst.msk [vmem:[%s580_s1] sm:$0xff] %vm201_vm2, %v200_v16  }
  0x8c   :  { %v221_v17 = vpop.permute.xlu1 %220  }
  0x8d   :  { %387 = vst.msk [vmem:[%s580_s1 + $0x10] sm:$0xff] %vm201_vm2, %v221_v17  }
  0x8e   :  { %v210_v18 = vpop.permute.xlu0 %209  }
  0x8f   :  { %386 = vst.msk [vmem:[%s580_s1 + $0x8] sm:$0xff] %vm201_vm2, %v210_v18  }
  0x92   :  { %v243_v20 = vpop.permute.xlu0 %242  }
  0x93   :  { %v232_v19 = vpop.permute.xlu1 %231   ;;  %245 = vst.msk [vmem:[%s580_s1] sm:$0xff] %vm244_vm3, %v243_v20  }
  0x94   :  { %388 = vst.msk [vmem:[%s580_s1 + $0x18] sm:$0xff] %vm201_vm2, %v232_v19  }
  0x96   :  { %v264_v22 = vpop.permute.xlu0 %263  }
  0x97   :  { %v253_v21 = vpop.permute.xlu1 %252   ;;  %390 = vst.msk [vmem:[%s580_s1 + $0x10] sm:$0xff] %vm244_vm3, %v264_v22  }
  0x98   :  { %389 = vst.msk [vmem:[%s580_s1 + $0x8] sm:$0xff] %vm244_vm3, %v253_v21  }
  0x9a   :  { %v286_v24 = vpop.permute.xlu0 %285  }
  0x9b   :  { %v275_v23 = vpop.permute.xlu1 %274   ;;  %288 = vst.msk [vmem:[%s580_s1] sm:$0xff] %vm287_vm4, %v286_v24  }
  0x9c   :  { %391 = vst.msk [vmem:[%s580_s1 + $0x18] sm:$0xff] %vm244_vm3, %v275_v23  }
  0x9e   :  { %v307_v26 = vpop.permute.xlu0 %306  }
  0x9f   :  { %v296_v25 = vpop.permute.xlu1 %295   ;;  %393 = vst.msk [vmem:[%s580_s1 + $0x10] sm:$0xff] %vm287_vm4, %v307_v26  }
  0xa0   :  { %392 = vst.msk [vmem:[%s580_s1 + $0x8] sm:$0xff] %vm287_vm4, %v296_v25  }
  0xa3   :  { %v318_v27 = vpop.permute.xlu1 %317  }
  0xa4   :  { %394 = vst.msk [vmem:[%s580_s1 + $0x18] sm:$0xff] %vm287_vm4, %v318_v27  }

// kernel: eq.43
= control target key start
LH: loop header
LB: loop body
LE: loop exit
PB: predicated region body
PF: predicated region fallthrough
CT: control target
= control target key end

     0   :  { %vm7_vm0 = vcmask 261120   ;;  %s37_s8 = smov 32   ;;  %s38_s9 = smov 64   ;;  %vm13_vm1 = vcmask 1048320   ;;  %vm19_vm2 = vcmask 785920   ;;  %vm25_vm3 = vcmask 523520   ;;  %s55_s0 = inlined_call_operand.vmem [shape: s32[4,32], index: 0, kind: input, shape index: {}]   ;;  %s56_s1 = inlined_call_operand.vmem [shape: s32[128], index: 1, kind: output, shape index: {}]  }
   0x1   :  { %v4_v0 = vld [vmem:[%s55_s0] sm:$0xf]  ;;  %s36_s0 = smov 96  }
   0x2   :  { %5 = vst [vmem:[#allocation1] sm:$0xf] %v4_v0 }
   0x9   :  { %v10_v1 = vld [vmem:[#allocation1 + $0x3] sm:$0x1]   ;;  %v22_v2 = vld [vmem:[#allocation1 + $0x1] sm:$0x1]   ;;  %v6_v3 = vld [vmem:[#allocation1] sm:$0x1]  }
   0xa   :  { %11 = vrot.lane.b32.xlu0 %v10_v1, %s36_s0  ;;  %23 = vrot.lane.b32.xlu1 %v22_v2, %s37_s8  ;;  %v16_v4 = vld [vmem:[#allocation1 + $0x2] sm:$0x1]   ;;  %8 = vst.msk [vmem:[#allocation0] sm:$0x1] %vm7_vm0, %v6_v3  }
   0xe   :  { %17 = vrot.lane.b32.xlu0 %v16_v4, %s38_s9 }
  0x7c   :  { %v12_v5 = vpop.permute.xlu0 %11   ;;  %v24_v6 = vpop.permute.xlu1 %23  }
  0x7d   :  { %14 = vst.msk [vmem:[#allocation0] sm:$0x1] %vm13_vm1, %v12_v5  }
  0x80   :  { %v18_v7 = vpop.permute.xlu0 %17  }
  0x81   :  { %20 = vst.msk [vmem:[#allocation0] sm:$0x1] %vm19_vm2, %v18_v7  }
  0x82   :  { %26 = vst.msk [vmem:[#allocation0] sm:$0x1] %vm25_vm3, %v24_v6  }
  0x89   :  { %v30_v8 = vld [vmem:[#allocation0] sm:$0x1] }
  0x8a   :  { %32 = vst [vmem:[%s56_s1] sm:$0x1] %v30_v8 }

// kernel: image_caption_encoder_forward.1
= control target key start
LH: loop header
LB: loop body
LE: loop exit
PB: predicated region body
PF: predicated region fallthrough
CT: control target
= control target key end

     0   :  { %s4294_s0 = inlined_call_operand.vmem [shape: bf16[32,40], index: 0, kind: input, shape index: {}]   ;;  %s4295_s1 = inlined_call_operand.vmem [shape: bf16[40,32], index: 1, kind: input, shape index: {}]   ;;  %s4296_s2 = inlined_call_operand.vmem [shape: f32[32,32], index: 2, kind: input, shape index: {}]   ;;  %s4297_s3 = inlined_call_operand.vmem [shape: f32[32,128], index: 3, kind: input, shape index: {}]   ;;  %s4298_s4 = inlined_call_operand.vmem [shape: bf16[128,32], index: 4, kind: input, shape index: {}]   ;;  %s4299_s5 = inlined_call_operand.vmem [shape: bf16[128,128], index: 5, kind: input, shape index: {}]   ;;  %s4300_s6 = inlined_call_operand.vmem [shape: f32[4,32], index: 6, kind: input, shape index: {}]   ;;  %s4301_s7 = inlined_call_operand.vmem [shape: bf16[2,32,96], index: 7, kind: input, shape index: {}]   ;;  %s4302_s8 = inlined_call_operand.vmem [shape: f32[2,1,96], index: 8, kind: input, shape index: {}]   ;;  %s4303_s9 = inlined_call_operand.vmem [shape: bf16[2,32,32], index: 9, kind: input, shape index: {}]   ;;  %s4304_s10 = inlined_call_operand.vmem [shape: f32[2,6,32], index: 10, kind: input, shape index: {}]   ;;  %s4305_s11 = inlined_call_operand.vmem [shape: bf16[2,32,2048], index: 11, kind: input, shape index: {}]   ;;  %s4306_s12 = inlined_call_operand.vmem [shape: f32[2,1,2048], index: 12, kind: input, shape index: {}]   ;;  %s4307_s13 = inlined_call_operand.hbm [shape: bf16[2,32,2048], index: 13, kind: input, shape index: {}]   ;;  %s4308_s14 = inlined_call_operand.vmem [shape: f32[4,32], index: 14, kind: output, shape index: {}]  }
   0x1   :  { %4313 = sst [smem:[#allocation10_spill]] %s4300_s6 }
   0x2   :  { %4314 = sst [smem:[#allocation11_spill]] %s4307_s13 }
   0x3   :  { %4315 = sst [smem:[#allocation12_spill]] %s4308_s14 }
   0x4   :  { %19 = vsyncpa [#allocation4], 0 }
   0x5   :  { %21 = vsyncpa [#allocation4 + $0x1], 0  ;;  %s3690_s29 = smov 0   ;;  %s3692_s30 = smov 0  }
   0x6   :  { %s3694_s15 = smov 0   ;;  %s3696_s16 = smov 0  }
   0x7 LB: > { %4316 = sst [smem:[#allocation6_spill]] %s3595_s30  ;;  %s3709_s17 = sadd.s32 4294967295, %s3603_s16   ;;  %s3603_s16 = sphi %s3696_s16, %s4327_s16   ;;  %s3599_s15 = sphi %s3694_s15, %s4330_s15   ;;  %s3595_s30 = sphi %s3692_s30, %s4329_s30   ;;  %s3591_s29 = sphi %s3690_s29, %s4328_s29  }
   0x8   : > { %4317 = sst [smem:[#allocation7_spill]] %s3599_s15  ;;  %s3712_s18 = sadd.s32 1, %s3603_s16  }
   0x9   : > { %4318 = sst [smem:[#allocation8_spill]] %s3712_s18  ;;  %s334_s19 = ssub.s32 %s3603_s16, %s3712_s18 }
   0xa   : > { %s337_s20 = sadd.s32 1, %s3599_s15  ;;  %p335_p0 = scmp.eq.s32.totalorder %s334_s19, 0 }
   0xb   : > { %p344_p1 = scmp.ne.s32.totalorder %s3599_s15, %s3595_s30  ;;  %p345_p2 = scmp.eq.s32.totalorder %s3603_s16, 0 }
   0xc   : > { %p350_p3 = scmp.ne.s32.totalorder %s3595_s30, %s3591_s29  ;;  %p351_p5 = scmp.eq.s32.totalorder %s3709_s17, 0 }
   0xd   : > { %s3722_s21 = scalar_select %p335_p0, %s3599_s15, %s337_s20  }
   0xe   : > { %p346_p4 = por %p345_p2, %p344_p1  ;;  %p3435_p6 = scmp.lt.s32.totalorder %s3603_s16, 2 }
   0xf   : > { %4319 = sst [smem:[#allocation9_spill]] %s3722_s21  ;;  %p3726_p7 = por %p351_p5, %p350_p3 }
  0x10   : > { %s460_s23 = sand.u32 1, %s3599_s15   ;;  %s3209_s25 = sshll.u32 %s3603_s16, 12 }
  0x11   : > { %s3077_s24 = sshll.u32 %s460_s23, 8  ;;  %s4321_s13 = sld [smem:[#allocation11_spill]] }
  0x12   : > { %s464_s29 = scalar_lea.vmem [#allocation3], %s3077_s24  ;;  %p3739_p8 = pnand %p3435_p6, %p346_p4 }
  0x13   : > { %s471_s19 = sshll.u32 %s464_s29, 4  ;;  %s3744_s21 = scalar_lea.sflag [#allocation4], %s460_s23  ;;  %s3737_s19 = int_to_ptr.vmem [resolvable:$true] %s471_s19 }
  0x14   : > { %p3541_p11 = pneg %p3739_p8 }
  0x17   : > { %s3735_s28 = scalar_lea.hbm %s4321_s13, %s3209_s25  ;;  %s3544_s27 = scalar_lea.hbm %s4321_s13, 8192 }
  0x18   : > { %s3539_s26 = scalar_lea.hbm %s3735_s28, 4096  ;;  %p3545_p0 = scmp.lt.u32.totalorder %s3735_s28, %s4321_s13 }
  0x19   : > { %p3540_p10 = scmp.ne.s32.totalorder %s3735_s28, %s3539_s26  ;;  %p3546_p1 = scmp.lt.u32.totalorder %s3544_s27, %s3539_s26 }
  0x1a   : > { %p3548_p3 = scmp.lt.u32.totalorder %s3539_s26, %s3735_s28 }
  0x1b   : > { %p3542_p12 = pnand %p3541_p11, %p3540_p10  ;;  %p3547_p2 = por %p3546_p1, %p3545_p0 }
  0x1d   : > { %p3543_p13 = pneg %p3542_p12  ;;  %p3549_p4 = por %p3548_p3, %p3547_p2 }
  0x1f   : > { %p3550_p5 = pnand %p3549_p4, %p3543_p13 }
  0x21   : > { %3553 = shalt.err (!%p3550_p5)
}
  0x22   : > { %s3554_s23 = scalar_lea.vmem %s3737_s19, 4096  ;;  %s3605_s24 = smov [#allocation3]  }
  0x23   : > { %p3555_p6 = scmp.ne.s32.totalorder %s3737_s19, %s3554_s23  ;;  %s3559_s25 = sshll.u32 %s3605_s24, 4  ;;  %s3560_s25 = int_to_ptr.vmem [resolvable:$false] %s3559_s25 }
  0x24   : > { %s3561_s15 = scalar_lea.vmem %s3560_s25, 8192  ;;  %p3562_p9 = scmp.lt.s32.totalorder %s3737_s19, %s3560_s25 }
  0x25   : > { %p3557_p10 = pnand %p3555_p6, %p3541_p11  ;;  %p3563_p0 = scmp.lt.s32.totalorder %s3561_s15, %s3554_s23 }
  0x27   : > { %p3558_p12 = pneg %p3557_p10  ;;  %p3564_p1 = por %p3563_p0, %p3562_p9 }
  0x29   : > { %p3565_p2 = pnand %p3564_p1, %p3558_p12 }
  0x2b   : > { %3568 = shalt.err (!%p3565_p2)
}
  0x2c   : > { %s3606_s26 = smov 1024   ;;  %s3607_s27 = smov 64  }
  0x2d   : > { %3434 = dma.hbm_to_vmem [thread:$0]  (!%p3739_p8), %s3735_s28, 4096, %s3737_s19, %s3744_s21, %s3606_s26, %s3606_s26, %s3607_s27  }
  0x2e   : > { %p479_p11 = scmp.lt.s32.totalorder %s3603_s16, 3  ;;  %p4323_p13 = scmp.ge.s32.totalorder %s3603_s16, 1 }
  0x30   : > { %p480_p3 = pnand %p4323_p13, %p479_p11 }
  0x31   : > { %s485_s29 = sand.u32 (!%p480_p3), 1, %s3595_s30  }
  0x32   : > { %483 = sbr.rel (%p480_p3) target bundleno = 3538 (0xdd2), region = 76  ;;  %s3081_s23 = sshll.u32 (!%p480_p3), %s485_s29, 8 }
  0x33   : > { %s486_s24 = scalar_lea.sflag (!%p480_p3), [#allocation4], %s485_s29  ;;  %s3776_s25 = scalar_lea.vmem (!%p480_p3), [#allocation3], %s3081_s23 }
  0x39   : > { %3586 = dma.done.wait (%p3726_p7), %s486_s24, 4096  }
  0x3a   : > { %3588 = vsyncadd (%p3726_p7), %s486_s24, 4294963200  ;;  %p555_p9 = scmp.lt.s32.totalorder %s3709_s17, 1  ;;  %p3090_p7 = scmp.ne.s32.totalorder %s3709_s17, 0 }
  0x3b   : > { %v3477_v0 = vld [vmem:[%s4295_s1] sm:$0xff] (!%p3090_p7)   ;;  %v3478_v1 = vld [vmem:[%s4295_s1 + $0x8] sm:$0xff] (!%p3090_p7)   ;;  %vm624_vm0 = vcmask (!%p3090_p7), 326656   ;;  %v3479_v3 = vld [vmem:[%s4295_s1 + $0x10] ss:$0 sps:$4 sm:$0xff] (!%p3090_p7)   ;;  %vm631_vm1 = vcmask (!%p3090_p7), 1043456  }
  0x3c   : > { %s3784_s21 = scalar_select %p555_p9, %s3709_s17, 1 }
  0x3d   : > { %585 = sbr.rel (%p3090_p7) target bundleno = 291 (0x123), region = 84  ;;  %3261 = vmatprep.subr.bf16.mxu0 (!%p3090_p7), %v3477_v0  ;;  %v3480_v2 = vld [vmem:[%s4294_s0] sm:$0xff] (!%p3090_p7)   ;;  %v633_v4 = vsel (!%p3090_p7), %vm631_vm1, %v3479_v3, 0  ;;  %v3481_v5 = vld [vmem:[%s4294_s0 + $0x8] sm:$0xff] (!%p3090_p7)   ;;  %v597_v6 = vld [vmem:[%s4296_s2 + $0x10] sm:$0xff] (!%p3090_p7)  ;;  %vm684_vm2 = vcmask (!%p3090_p7), 261120  }
  0x3e   : > { %s3210_s16 = sshll.u32 %s3784_s21, 4  ;;  %s3086_s24 = sshll.u32 %s3784_s21, 3  ;;  %3262 = vmatpush3.bf16.msra.mxu0 (!%p3090_p7), %v3477_v0  ;;  %3267 = vmatprep.mubr.msk.bf16.mxu0 (!%p3090_p7), %vm624_vm0, %v3480_v2  ;;  %v595_v7 = vld [vmem:[%s4296_s2] sm:$0xff] (!%p3090_p7)  ;;  %v598_v9 = vld [vmem:[%s4296_s2 + $0x18] sm:$0xff] (!%p3090_p7)  ;;  %v596_v12 = vld [vmem:[%s4296_s2 + $0x8] sm:$0xff] (!%p3090_p7) }
  0x3f   : > { %s3794_s27 = scalar_lea.vmem %s4301_s7, %s3210_s16  ;;  %s3799_s23 = scalar_lea.vmem %s4303_s9, %s3210_s16  ;;  %3263 = vmatprep.subr.bf16.mxu0 (!%p3090_p7), %v3478_v1 }
  0x40   : > { %s3212_s13 = sshll.u32 %s3784_s21, 8  ;;  %s3806_s14 = scalar_lea.vmem %s4304_s10, %s3086_s24 }
  0x41   : > { %s3811_s19 = scalar_lea.vmem %s4305_s11, %s3212_s13  ;;  %s3816_s20 = scalar_lea.vmem %s4306_s12, %s3210_s16 }
  0x42   : > { %3264 = vmatpush3.bf16.msra.mxu0 (!%p3090_p7), %v3478_v1 }
  0x43   : > { %3420 = vmatprep.subr.msk.bf16.mxu0 (!%p3090_p7), %vm631_vm1, %v3479_v3 }
  0x46   : > { %3266 = vmatpush3.bf16.msra.mxu0 %v633_v4 }
  0x49   : > { %3268 = vmatmul.mubr.msk.bf16.vlgmr.msra.gmra.mrb[0].mxu0 %vm624_vm0, %v3481_v5 }
 0x11c   : > { %v3269_v8 = vpop.f32.mrb[0].mxu0 }
 0x11d   : > { %v678_v10 = vadd.f32 %v3269_v8, %v597_v6  ;;  %v669_v11 = vpop.f32.mrb[1].mxu0 }
 0x11e   : > { %v670_v13 = vadd.f32 %v669_v11, %v595_v7  ;;  %v3270_v14 = vpop.f32.mrb[2].mxu0 }
 0x11f   : > { %687 = vst.msk [vmem:[#allocation2 + $0x10] sm:$0xff] %vm684_vm2, %v678_v10  ;;  %v681_v15 = vadd.f32 %v3270_v14, %v598_v9  ;;  %v672_v16 = vpop.f32.mrb[3].mxu0 }
 0x120   : > { %685 = vst.msk [vmem:[#allocation2] sm:$0xff] %vm684_vm2, %v670_v13  ;;  %v673_v17 = vadd.f32 %v672_v16, %v596_v12 }
 0x121   : > { %688 = vst.msk [vmem:[#allocation2 + $0x18] sm:$0xff] %vm684_vm2, %v681_v15 }
 0x122   : > { %686 = vst.msk [vmem:[#allocation2 + $0x8] sm:$0xff] %vm684_vm2, %v673_v17 }
 0x123 PF: > { %v3482_v18 = vld [vmem:[%s3794_s27] sm:$0xff]   ;;  %v3483_v19 = vld [vmem:[%s3794_s27 + $0x8] sm:$0xff]   ;;  %vm718_vm3 = vcmask 261120   ;;  %v3861_v25 = vld [vmem:[%s4298_s4 + $0x10] sm:$0xff]   ;;  %s3608_s26 = smov 32   ;;  %s4324_s18 = scalar_lea.vmem %s4302_s8, %s3784_s21 }
 0x124   : > { %3271 = vmatprep.subr.bf16.mxu0 %v3482_v18  ;;  %v3867_v26 = vld [vmem:[%s4298_s4] sm:$0xff]   ;;  %836 = vrot.lane.b32.xlu1 %v3861_v25, %s3608_s26  ;;  %v3875_v28 = vld [vmem:[%s4298_s4 + $0x18] sm:$0xff]   ;;  %v3881_v29 = vld [vmem:[%s4298_s4 + $0x8] sm:$0xff]   ;;  %s3609_s21 = smov 96   ;;  %s3610_s16 = smov 64  }
 0x125   : > { %3272 = vmatpush3.bf16.msra.mxu0 %v3482_v18  ;;  %832 = vrot.lane.b32.xlu0 %v3867_v26, %s3608_s26  ;;  %v3888_v30 = vld [vmem:[%s4298_s4 + $0x28] sm:$0xff]   ;;  %v3894_v31 = vld [vmem:[%s4298_s4 + $0x20] sm:$0xff]   ;;  %v3899_v32 = vld [vmem:[%s4298_s4 + $0x38] sm:$0xff]   ;;  %p3205_p8 = scmp.ne.s32.totalorder %s3709_s17, 1 }
 0x126   : > { %v3852_v22 = vld [vmem:[#allocation2 + $0x10] sm:$0xff]  ;;  %3273 = vmatprep.subr.bf16.mxu0 %v3483_v19  ;;  %v3098_v37 = vld [vmem:[%s4324_s18] ss:$0 sm:$0xff]  ;;  %v3493_v14 = vld [vmem:[%s4299_s5 + $0x8] sm:$0xff]   ;;  %vm3613_vm4 = vmmov (!%p3205_p8), 0   ;;  %vm2951_vm5 = vcmask (!%p3205_p8), 257024  }
 0x127   : > { %v3848_v20 = vld [vmem:[#allocation2] sm:$0xff]  ;;  %v3904_v33 = vld [vmem:[%s4298_s4 + $0x30] sm:$0xff]   ;;  %v897_v18 = vld [vmem:[%s4297_s3 + $0x8] sm:$0xff] }
 0x128   : > { %v3856_v24 = vld [vmem:[#allocation2 + $0x18] sm:$0xff]  ;;  %838 = vrot.lane.b32.xlu1 %v3875_v28, %s3608_s26  ;;  %v3492_v13 = vld [vmem:[%s4299_s5] sm:$0xff]  }
 0x129   : > { %v3850_v21 = vld [vmem:[#allocation2 + $0x8] sm:$0xff]  ;;  %v694_v27 = vpack.c.bf16 %v3856_v24, %v3852_v22  ;;  %3274 = vmatpush3.bf16.msra.mxu0 %v3483_v19  ;;  %834 = vrot.lane.b32.xlu0 %v3881_v29, %s3608_s26  ;;  %v896_v15 = vld [vmem:[%s4297_s3] sm:$0xff] }
 0x12a   : > { %v693_v23 = vpack.c.bf16 %v3850_v21, %v3848_v20  ;;  %3299 = vmatprep.subr.bf16.mxu0 %v3492_v13 }
 0x12c   : > { %3275 = vmatprep.mubr.msk.bf16.mxu0 %vm718_vm3, %v693_v23  ;;  %842 = vrot.lane.b32.xlu1 %v3888_v30, %s3608_s26 }
 0x12d   : > { %3276 = vmatmul.mubr.msk.bf16.vlgmr.msra.gmra.mrb[0].mxu0 %vm718_vm3, %v694_v27  ;;  %840 = vrot.lane.b32.xlu0 %v3894_v31, %s3608_s26  ;;  %v898_v27 = vld [vmem:[%s4297_s3 + $0x10] sm:$0xff] }
 0x12e   : > { %3300 = vmatpush3.bf16.msra.mxu0 %v3492_v13 }
 0x12f   : > { %3301 = vmatprep.subr.bf16.mxu0 %v3493_v14 }
 0x130   : > { %846 = vrot.lane.b32.xlu1 %v3899_v32, %s3608_s26 }
 0x131   : > { %844 = vrot.lane.b32.xlu0 %v3904_v33, %s3608_s26 }
 0x132   : > { %3302 = vmatpush3.bf16.msra.mxu0 %v3493_v14 }
 0x196   : > { %v837_v34 = vpop.permute.xlu1 %836 }
 0x197   : > { %v833_v35 = vpop.permute.xlu0 %832 }
 0x19a   : > { %v839_v43 = vpop.permute.xlu1 %838 }
 0x19b   : > { %v835_v46 = vpop.permute.xlu0 %834 }
 0x19e   : > { %v843_v51 = vpop.permute.xlu1 %842 }
 0x19f   : > { %v841_v52 = vpop.permute.xlu0 %840 }
 0x1a2   : > { %v847_v56 = vpop.permute.xlu1 %846 }
 0x1a3   : > { %v845_v58 = vpop.permute.xlu0 %844 }
 0x200   : > { %v3277_v36 = vpop.f32.mrb[0].mxu0 }
 0x201   : > { %v759_v38 = vpop.f32.mrb[1].mxu0  ;;  %v768_v40 = vadd.f32 %v3277_v36, %v3098_v37 }
 0x202   : > { %v3278_v39 = vpop.f32.mrb[2].mxu0  ;;  %v760_v44 = vadd.f32 %v3098_v37, %v759_v38 }
 0x203   : > { %v771_v41 = vadd.f32 %v3278_v39, %v3098_v37  ;;  %v762_v42 = vpop.f32.mrb[3].mxu0  ;;  %v3494_v39 = vld [vmem:[%s4299_s5 + $0x10] sm:$0xff]  }
 0x204   : > { %v763_v45 = vadd.f32 %v3098_v37, %v762_v42  ;;  %v899_v37 = vld [vmem:[%s4297_s3 + $0x18] sm:$0xff]  ;;  %3303 = vmatprep.subr.bf16.mxu0 %v3494_v39  ;;  %v3497_v42 = vld [vmem:[%s4299_s5 + $0x28] sm:$0xff]  }
 0x205   : > { %v3915_v47 = vpack.c.bf16 %v771_v41, %v768_v40  ;;  %3304 = vmatpush3.bf16.msra.mxu0 %v3494_v39  ;;  %v3495_v40 = vld [vmem:[%s4299_s5 + $0x18] sm:$0xff]   ;;  %v3496_v41 = vld [vmem:[%s4299_s5 + $0x20] sm:$0xff]  }
 0x206   : > { %v3917_v48 = vpack.c.bf16 %v763_v45, %v760_v44  ;;  %3305 = vmatprep.subr.bf16.mxu0 %v3495_v40 }
 0x207   : > { %v857_v49 = vmul.bf16 %v835_v46, %v3915_v47  ;;  %v859_v53 = vmul.bf16 %v839_v43, %v3915_v47  ;;  %v861_v55 = vmul.bf16 %v843_v51, %v3915_v47  ;;  %v863_v59 = vmul.bf16 %v847_v56, %v3915_v47 }
 0x208   : > { %3295 = vmatprep.mubr.msk.bf16.mxu1 %vm718_vm3, %v3917_v48  ;;  %v856_v50 = vmul.bf16 %v833_v35, %v3917_v48  ;;  %v858_v54 = vmul.bf16 %v837_v34, %v3917_v48  ;;  %v860_v57 = vmul.bf16 %v841_v52, %v3917_v48  ;;  %v862_v60 = vmul.bf16 %v845_v58, %v3917_v48 }
 0x209   : > { %910 = vrot.lane.b32.xlu1 %v857_v49, %s3609_s21  ;;  %3306 = vmatpush3.bf16.msra.mxu0 %v3495_v40 }
 0x20a   : > { %908 = vrot.lane.b32.xlu0 %v856_v50, %s3609_s21  ;;  %3307 = vmatprep.subr.bf16.mxu0 %v3496_v41 }
 0x20d   : > { %914 = vrot.lane.b32.xlu1 %v859_v53, %s3609_s21  ;;  %3308 = vmatpush3.bf16.msra.mxu0 %v3496_v41 }
 0x20e   : > { %912 = vrot.lane.b32.xlu0 %v858_v54, %s3609_s21  ;;  %3309 = vmatprep.subr.bf16.mxu0 %v3497_v42 }
 0x211   : > { %918 = vrot.lane.b32.xlu1 %v861_v55, %s3609_s21  ;;  %3310 = vmatpush3.bf16.msra.mxu0 %v3497_v42 }
 0x212   : > { %916 = vrot.lane.b32.xlu0 %v860_v57, %s3609_s21 }
 0x215   : > { %922 = vrot.lane.b32.xlu1 %v863_v59, %s3609_s21 }
 0x216   : > { %920 = vrot.lane.b32.xlu0 %v862_v60, %s3609_s21 }
 0x27b   : > { %v911_v63 = vpop.permute.xlu1 %910 }
 0x27c   : > { %v909_v61 = vpop.permute.xlu0 %908  ;;  %v934_v0 = vsel %vm718_vm3, %v911_v63, 0 }
 0x27d   : > { %3421 = vmatprep.subr.msk.bf16.mxu1 %vm718_vm3, %v909_v61  ;;  %v931_v62 = vsel %vm718_vm3, %v909_v61, 0 }
 0x27e   : > { %3280 = vmatpush3.bf16.xpose.msra.mxu1 %v931_v62 }
 0x27f   : > { %3422 = vmatprep.subr.msk.bf16.mxu1 %vm718_vm3, %v911_v63  ;;  %v915_v3 = vpop.permute.xlu1 %914 }
 0x280   : > { %v913_v1 = vpop.permute.xlu0 %912  ;;  %v940_v4 = vsel %vm718_vm3, %v915_v3, 0 }
 0x281   : > { %v937_v2 = vsel %vm718_vm3, %v913_v1, 0 }
 0x283   : > { %v919_v7 = vpop.permute.xlu1 %918 }
 0x284   : > { %v917_v5 = vpop.permute.xlu0 %916  ;;  %v946_v8 = vsel %vm718_vm3, %v919_v7, 0 }
 0x285   : > { %v943_v6 = vsel %vm718_vm3, %v917_v5, 0 }
 0x286   : > { %3282 = vmatpush3.bf16.xpose.msra.mxu1 %v934_v0 }
 0x287   : > { %3423 = vmatprep.subr.msk.bf16.mxu1 %vm718_vm3, %v913_v1  ;;  %v923_v11 = vpop.permute.xlu1 %922 }
 0x288   : > { %v921_v9 = vpop.permute.xlu0 %920  ;;  %v952_v12 = vsel %vm718_vm3, %v923_v11, 0 }
 0x289   : > { %v949_v10 = vsel %vm718_vm3, %v921_v9, 0 }
 0x28e   : > { %3284 = vmatpush3.bf16.xpose.msra.mxu1 %v937_v2 }
 0x28f   : > { %3424 = vmatprep.subr.msk.bf16.mxu1 %vm718_vm3, %v915_v3 }
 0x296   : > { %3286 = vmatpush3.bf16.xpose.msra.mxu1 %v940_v4 }
 0x297   : > { %3425 = vmatprep.subr.msk.bf16.mxu1 %vm718_vm3, %v917_v5 }
 0x29e   : > { %3288 = vmatpush3.bf16.xpose.msra.mxu1 %v943_v6 }
 0x29f   : > { %3426 = vmatprep.subr.msk.bf16.mxu1 %vm718_vm3, %v919_v7 }
 0x2a6   : > { %3290 = vmatpush3.bf16.xpose.msra.mxu1 %v946_v8 }
 0x2a7   : > { %3427 = vmatprep.subr.msk.bf16.mxu1 %vm718_vm3, %v921_v9 }
 0x2ae   : > { %3292 = vmatpush3.bf16.xpose.msra.mxu1 %v949_v10 }
 0x2af   : > { %3428 = vmatprep.subr.msk.bf16.mxu1 %vm718_vm3, %v923_v11  ;;  %v3500_v11 = vld [vmem:[%s3799_s23] sm:$0xff]  }
 0x2b6   : > { %3294 = vmatpush3.bf16.xpose.msra.mxu1 %v952_v12 }
 0x2b7   : > { %3339 = vmatprep.subr.bf16.mxu1 %v3500_v11 }
 0x2bd   : > { %3296 = vmatmul.mubr.msk.bf16.vlgmr.msra.gmra.mrb[0].mxu1 %vm718_vm3, %v3915_v47 }
 0x2be   : > { %3340 = vmatpush3.bf16.msra.mxu1 %v3500_v11 }
 0x390   : > { %v3297_v16 = vpop.f32.mrb[0].mxu1 }
 0x391   : > { %v988_v17 = vpop.f32.mrb[1].mxu1  ;;  %v997_v36 = vadd.f32 %v3297_v16, %v898_v27 }
 0x392   : > { %v989_v19 = vadd.f32 %v988_v17, %v896_v15  ;;  %v3298_v23 = vpop.f32.mrb[2].mxu1 }
 0x393   : > { %v991_v34 = vpop.f32.mrb[3].mxu1  ;;  %v1000_v38 = vadd.f32 %v3298_v23, %v899_v37 }
 0x394   : > { %v992_v35 = vadd.f32 %v991_v34, %v897_v18  ;;  %1003 = vmax.xlane.f32.xlu0 %v989_v19 }
 0x396   : > { %1005 = vmax.xlane.f32.xlu1 %v992_v35 }
 0x398   : > { %1007 = vmax.xlane.f32.xlu0 %v997_v36 }
 0x39c   : > { %1009 = vmax.xlane.f32.xlu0 %v1000_v38 }
 0x3a7   : > { %864 = vrot.lane.b32.xlu1 %v3867_v26, %s3610_s16  ;;  %v3498_v26 = vld [vmem:[%s4299_s5 + $0x30] sm:$0xff]  }
 0x3a8   : > { %3311 = vmatprep.subr.bf16.mxu0 %v3498_v26 }
 0x3a9   : > { %3312 = vmatpush3.bf16.msra.mxu0 %v3498_v26 }
 0x3ab   : > { %868 = vrot.lane.b32.xlu1 %v3861_v25, %s3610_s16  ;;  %v3499_v25 = vld [vmem:[%s4299_s5 + $0x38] sm:$0xff]  }
 0x3ac   : > { %3313 = vmatprep.subr.bf16.mxu0 %v3499_v25 }
 0x3ad   : > { %3314 = vmatpush3.bf16.msra.mxu0 %v3499_v25 }
 0x3af   : > { %870 = vrot.lane.b32.xlu1 %v3875_v28, %s3610_s16 }
 0x3b2   : > { %866 = vrot.lane.b32.xlu0 %v3881_v29, %s3610_s16 }
 0x3b3   : > { %874 = vrot.lane.b32.xlu1 %v3888_v30, %s3610_s16 }
 0x3b6   : > { %872 = vrot.lane.b32.xlu0 %v3894_v31, %s3610_s16 }
 0x3b7   : > { %878 = vrot.lane.b32.xlu1 %v3899_v32, %s3610_s16 }
 0x3ba   : > { %876 = vrot.lane.b32.xlu0 %v3904_v33, %s3610_s16 }
 0x421   : > { %v1004_v28 = vpop.xlane.xlu0 %1003 }
 0x422   : > { %v1011_v29 = vsub.f32 %v989_v19, %v1004_v28 }
 0x423   : > { %v1006_v30 = vpop.xlane.xlu1 %1005 }
 0x424   : > { %v1015_v43 = vmul.f32 1.442695, %v1011_v29  ;;  %v1012_v44 = vsub.f32 %v992_v35, %v1006_v30  ;;  %v3501_v29 = vld [vmem:[%s3799_s23 + $0x8] sm:$0xff]  }
 0x425   : > { %v1008_v45 = vpop.xlane.xlu0 %1007  ;;  %3341 = vmatprep.subr.bf16.mxu1 %v3501_v29 }
 0x426   : > { %v1017_v46 = vmul.f32 1.442695, %v1012_v44  ;;  %v1013_v49 = vsub.f32 %v997_v36, %v1008_v45  ;;  %3502 = vpow2.f32 %v1015_v43  ;;  %3342 = vmatpush3.bf16.msra.mxu1 %v3501_v29  ;;  %v3611_v29 = vmov 0  }
 0x427   : > { %v865_v50 = vpop.permute.xlu1 %864 }
 0x428   : > { %3504 = vpow2.f32 %v1017_v46  ;;  %v888_v31 = vmul.bf16 %v865_v50, %v3917_v48  ;;  %v1019_v51 = vmul.f32 1.442695, %v1013_v49  ;;  %v1240_v50 = vlaneseq }
 0x429   : > { %v1010_v32 = vpop.xlane.xlu0 %1009 }
 0x42a   : > { %v1014_v52 = vsub.f32 %v1000_v38, %v1010_v32  ;;  %1160 = vrot.lane.b32.xlu0 %v888_v31, %s3610_s16  ;;  %3506 = vpow2.f32 %v1019_v51  ;;  %v4027_v31 = vshrl.u32 %v1240_v50, 7  ;;  %v4033_v32 = vld [vmem:[%s3806_s14] sm:$0x3f] }
 0x42b   : > { %v869_v53 = vpop.permute.xlu1 %868 }
 0x42c   : > { %v1021_v33 = vmul.f32 1.442695, %v1014_v52  ;;  %v890_v54 = vmul.bf16 %v869_v53, %v3917_v48  ;;  %v4030_v51 = vsub.s32 0, %v4027_v31 }
 0x42d   : > { %v867_v55 = vpop.permute.xlu0 %866 }
 0x42e   : > { %3508 = vpow2.f32 %v1021_v33  ;;  %v889_v56 = vmul.bf16 %v867_v55, %v3915_v47  ;;  %1164 = vrot.lane.b32.xlu0 %v890_v54, %s3610_s16  ;;  %v1243_v52 = vrot.slane %v4033_v32, %v4030_v51 }
 0x42f   : > { %v871_v57 = vpop.permute.xlu1 %870 }
 0x430   : > { %1162 = vrot.lane.b32.xlu1 %v889_v56, %s3610_s16  ;;  %v4005_v58 = vpop.eup %3502  ;;  %v891_v61 = vmul.bf16 %v871_v57, %v3915_v47 }
 0x431   : > { %v873_v59 = vpop.permute.xlu0 %872 }
 0x432   : > { %v4007_v60 = vpop.eup %3504  ;;  %v892_v62 = vmul.bf16 %v873_v59, %v3917_v48 }
 0x433   : > { %v875_v63 = vpop.permute.xlu1 %874  ;;  %v1023_v0 = vpack.c.bf16 %v4007_v60, %v4005_v58 }
 0x434   : > { %1166 = vrot.lane.b32.xlu1 %v891_v61, %s3610_s16  ;;  %1168 = vrot.lane.b32.xlu0 %v892_v62, %s3610_s16  ;;  %v893_v2 = vmul.bf16 %v875_v63, %v3915_v47  ;;  %v3507_v4 = vpop.eup %3506 }
 0x435   : > { %3315 = vmatprep.mubr.bf16.mxu0 %v1023_v0  ;;  %v877_v1 = vpop.permute.xlu0 %876 }
 0x436   : > { %v894_v3 = vmul.bf16 %v877_v1, %v3917_v48 }
 0x437   : > { %v879_v5 = vpop.permute.xlu1 %878 }
 0x438   : > { %v3509_v6 = vpop.eup %3508  ;;  %1170 = vrot.lane.b32.xlu1 %v893_v2, %s3610_s16  ;;  %1172 = vrot.lane.b32.xlu0 %v894_v3, %s3610_s16  ;;  %v895_v8 = vmul.bf16 %v879_v5, %v3915_v47 }
 0x439   : > { %v1024_v7 = vpack.c.bf16 %v3509_v6, %v3507_v4 }
 0x43b   : > { %3316 = vmatmul.mubr.bf16.vlgmr.msra.gmra.mrb[4].mxu0 %v1024_v7 }
 0x43c   : > { %1174 = vrot.lane.b32.xlu1 %v895_v8, %s3610_s16 }
 0x49c   : > { %v1161_v9 = vpop.permute.xlu0 %1160 }
 0x49d   : > { %3319 = vmatprep.subr.bf16.mxu0 %v1161_v9 }
 0x49e   : > { %3320 = vmatpush3.bf16.msra.mxu0 %v1161_v9 }
 0x4a0   : > { %v1165_v48 = vpop.permute.xlu0 %1164 }
 0x4a2   : > { %v1163_v10 = vpop.permute.xlu1 %1162 }
 0x4a3   : > { %3321 = vmatprep.subr.bf16.mxu0 %v1163_v10 }
 0x4a4   : > { %3322 = vmatpush3.bf16.msra.mxu0 %v1163_v10 }
 0x4a5   : > { %3323 = vmatprep.subr.bf16.mxu0 %v1165_v48 }
 0x4a6   : > { %v1167_v12 = vpop.permute.xlu1 %1166  ;;  %v1169_v13 = vpop.permute.xlu0 %1168 }
 0x4a8   : > { %3324 = vmatpush3.bf16.msra.mxu0 %v1165_v48 }
 0x4a9   : > { %3325 = vmatprep.subr.bf16.mxu0 %v1167_v12 }
 0x4aa   : > { %v1171_v47 = vpop.permute.xlu1 %1170  ;;  %v1173_v14 = vpop.permute.xlu0 %1172 }
 0x4ac   : > { %3326 = vmatpush3.bf16.msra.mxu0 %v1167_v12 }
 0x4ad   : > { %3327 = vmatprep.subr.bf16.mxu0 %v1169_v13 }
 0x4ae   : > { %v1175_v15 = vpop.permute.xlu1 %1174 }
 0x4b0   : > { %3328 = vmatpush3.bf16.msra.mxu0 %v1169_v13 }
 0x4b1   : > { %3329 = vmatprep.subr.bf16.mxu0 %v1171_v47 }
 0x4b4   : > { %3330 = vmatpush3.bf16.msra.mxu0 %v1171_v47 }
 0x4b5   : > { %3331 = vmatprep.subr.bf16.mxu0 %v1173_v14 }
 0x4b8   : > { %3332 = vmatpush3.bf16.msra.mxu0 %v1173_v14 }
 0x4b9   : > { %3333 = vmatprep.subr.bf16.mxu0 %v1175_v15 }
 0x4bc   : > { %3334 = vmatpush3.bf16.msra.mxu0 %v1175_v15 }
 0x50e   : > { %v3317_v16 = vpop.f32.mrb[4].mxu0 }
 0x50f   : > { %v1140_v17 = vmax.f32 %v3317_v16, 1e-30  ;;  %v1123_v18 = vpop.f32.mrb[5].mxu0 }
 0x510   : > { %v1138_v19 = vmax.f32 %v1123_v18, 1e-30  ;;  %v3318_v23 = vpop.f32.mrb[6].mxu0  ;;  %v1394_v18 = vld [vmem:[%s3811_s19] sm:$0xff] }
 0x511   : > { %3510 = vrcp.f32 %v1140_v17  ;;  %v1141_v27 = vmax.f32 %v3318_v23, 1e-30  ;;  %v1126_v34 = vpop.f32.mrb[7].mxu0  ;;  %v1395_v23 = vld [vmem:[%s3811_s19 + $0x8] sm:$0xff] }
 0x512   : > { %3512 = vrcp.f32 %v1138_v19  ;;  %v1139_v35 = vmax.f32 %v1126_v34, 1e-30  ;;  %v1396_v19 = vld [vmem:[%s3811_s19 + $0x40] sm:$0xff]  ;;  %v1397_v34 = vld [vmem:[%s3811_s19 + $0x48] sm:$0xff] }
 0x513   : > { %3514 = vrcp.f32 %v1141_v27  ;;  %v3126_v27 = vcombine.high %v1394_v18, %v1396_v19 }
 0x514   : > { %3516 = vrcp.f32 %v1139_v35  ;;  %v3125_v35 = vcombine.low %v1394_v18, %v1396_v19  ;;  %v1605_v18 = vld [vmem:[%s3776_s25 + $0x88] sm:$0xff] }
 0x515   : > { %1470 = vmatprep.subr.bf16.mxu0 %v3126_v27 }
 0x51b   : > { %v3511_v36 = vpop.eup %3510 }
 0x51c   : > { %v3513_v37 = vpop.eup %3512  ;;  %v1148_v40 = vmul.f32 %v3511_v36, %v3507_v4  ;;  %v3127_v36 = vcombine.low %v1395_v23, %v1397_v34 }
 0x51d   : > { %v3515_v38 = vpop.eup %3514  ;;  %v1146_v42 = vmul.f32 %v3513_v37, %v4005_v58  ;;  %v3128_v37 = vcombine.high %v1395_v23, %v1397_v34  ;;  %v1607_v23 = vld [vmem:[%s3776_s25 + $0xc8] sm:$0xff] }
 0x51e   : > { %v3517_v39 = vpop.eup %3516  ;;  %v1149_v41 = vmul.f32 %v3515_v38, %v3509_v6  ;;  %v1398_v38 = vld [vmem:[%s3811_s19 + $0x80] sm:$0xff]  ;;  %v3143_v34 = vcombine.low %v1605_v18, %v1607_v23 }
 0x51f   : > { %v1147_v26 = vmul.f32 %v3517_v39, %v4007_v60  ;;  %1523 = vmatprep.subr.bf16.mxu1 %v3128_v37  ;;  %v1400_v39 = vld [vmem:[%s3811_s19 + $0xc0] sm:$0xff]  ;;  %v4127_v37 = vld [vmem:[%s3811_s19 + $0x50] sm:$0xff] }
 0x520   : > { %v1151_v25 = vpack.c.bf16 %v1149_v41, %v1148_v40  ;;  %v1399_v40 = vld [vmem:[%s3811_s19 + $0x88] sm:$0xff]  ;;  %v3130_v41 = vcombine.high %v1398_v38, %v1400_v39 }
 0x521   : > { %v1150_v28 = vpack.c.bf16 %v1147_v26, %v1146_v42  ;;  %v1401_v42 = vld [vmem:[%s3811_s19 + $0xc8] sm:$0xff]  ;;  %v3129_v26 = vcombine.low %v1398_v38, %v1400_v39 }
 0x523   : > { %3335 = vmatprep.mubr.bf16.mxu0 %v1150_v28  ;;  %v3132_v28 = vcombine.high %v1399_v40, %v1401_v42 }
 0x524   : > { %3336 = vmatmul.mubr.bf16.vlgmr.msra.gmra.mrb[8].mxu0 %v1151_v25  ;;  %v3131_v25 = vcombine.low %v1399_v40, %v1401_v42  ;;  %v1402_v40 = vld [vmem:[%s3816_s20] sm:$0xf] }
 0x525   : > { %1471 = vmatpush1.bf16.msra.mxu0 %v3125_v35  ;;  %1502 = vmatprep.mubr.bf16.mxu0 %v3611_v29  ;;  %v3144_v35 = vcombine.high %v1605_v18, %v1607_v23  ;;  %v1407_v42 = vrot.slane %v1402_v40, %v4030_v51  ;;  %v1753_v23 = vld [vmem:[%s3811_s19 + $0x58] sm:$0xff] }
 0x526   : > { %1472 = vmatprep.subr.bf16.mxu0 %v3130_v41  ;;  %v4135_v41 = vsub.s32 3, %v4027_v31 }
 0x529   : > { %1473 = vmatpush1.bf16.msra.mxu0 %v3129_v26 }
 0x5f7   : > { %v3337_v30 = vpop.f32.mrb[8].mxu0 }
 0x5f8   : > { %v1218_v43 = vpop.f32.mrb[9].mxu0 }
 0x5f9   : > { %v3338_v44 = vpop.f32.mrb[10].mxu0 }
 0x5fa   : > { %v1235_v45 = vpack.c.bf16 %v3338_v44, %v3337_v30  ;;  %v1221_v46 = vpop.f32.mrb[11].mxu0  ;;  %v1600_v30 = vld [vmem:[%s3776_s25] sm:$0xff]  ;;  %v1601_v44 = vld [vmem:[%s3776_s25 + $0x8] sm:$0xff] }
 0x5fb   : > { %v1234_v49 = vpack.c.bf16 %v1221_v46, %v1218_v43  ;;  %v1602_v43 = vld [vmem:[%s3776_s25 + $0x40] sm:$0xff] }
 0x5fc   : > { %v3138_v46 = vcombine.high %v1600_v30, %v1602_v43 }
 0x5fd   : > { %3343 = vmatprep.mubr.msk.bf16.mxu1 %vm718_vm3, %v1234_v49  ;;  %v1603_v49 = vld [vmem:[%s3776_s25 + $0x48] sm:$0xff] }
 0x5fe   : > { %3344 = vmatmul.mubr.msk.bf16.vlgmr.msra.gmra.mrb[4].mxu1 %vm718_vm3, %v1235_v45  ;;  %v3137_v45 = vcombine.low %v1600_v30, %v1602_v43  ;;  %v3139_v50 = vcombine.low %v1601_v44, %v1603_v49 }
 0x5ff   : > { %1524 = vmatpush1.bf16.msra.mxu1 %v3127_v36  ;;  %1555 = vmatprep.mubr.bf16.mxu1 %v3611_v29  ;;  %v4124_v36 = vld [vmem:[%s3811_s19 + $0x10] sm:$0xff] }
 0x600   : > { %1525 = vmatprep.subr.bf16.mxu1 %v3132_v28  ;;  %v3145_v38 = vcombine.low %v4124_v36, %v4127_v37  ;;  %v3146_v39 = vcombine.high %v4124_v36, %v4127_v37  ;;  %v1419_v28 = vrot.slane %v1402_v40, %v4135_v41 }
 0x603   : > { %1526 = vmatpush1.bf16.msra.mxu1 %v3131_v25 }
 0x604   : > { %1648 = vmatprep.subr.bf16.mxu1 %v3138_v46 }
 0x6d1   : > { %v3345_v53 = vpop.f32.mrb[4].mxu1 }
 0x6d2   : > { %v1296_v33 = vpop.f32.mrb[5].mxu1  ;;  %v1305_v54 = vadd.f32 %v3345_v53, %v1243_v52 }
 0x6d3   : > { %v1297_v55 = vadd.f32 %v1296_v33, %v1243_v52  ;;  %v3346_v56 = vpop.f32.mrb[6].mxu1 }
 0x6d4   : > { %v1299_v57 = vpop.f32.mrb[7].mxu1  ;;  %v1308_v60 = vadd.f32 %v3346_v56, %v1243_v52  ;;  %v1313_v63 = vadd.f32 %v1305_v54, %v3852_v22 }
 0x6d5   : > { %v1300_v58 = vadd.f32 %v1299_v57, %v1243_v52  ;;  %v1311_v59 = vadd.f32 %v1297_v55, %v3848_v20  ;;  %v3140_v52 = vcombine.high %v1601_v44, %v1603_v49 }
 0x6d6   : > { %v1321_v1 = vsel %vm718_vm3, %v1313_v63, 0.0  ;;  %v1314_v2 = vadd.f32 %v1308_v60, %v3856_v24 }
 0x6d7   : > { %v1315_v61 = vsel %vm718_vm3, %v1311_v59, 0.0  ;;  %v1312_v62 = vadd.f32 %v1300_v58, %v3850_v21  ;;  %1697 = vmatprep.subr.bf16.mxu0 %v3140_v52 }
 0x6d8   : > { %1316 = vadd.xlane.f32.xlu0 %v1315_v61  ;;  %v1324_v3 = vsel %vm718_vm3, %v1314_v2, 0.0 }
 0x6d9   : > { %v1318_v0 = vsel %vm718_vm3, %v1312_v62, 0.0 }
 0x6da   : > { %1319 = vadd.xlane.f32.xlu1 %v1318_v0 }
 0x6dc   : > { %1322 = vadd.xlane.f32.xlu0 %v1321_v1 }
 0x6e0   : > { %1325 = vadd.xlane.f32.xlu0 %v1324_v3 }
 0x765   : > { %v1317_v20 = vpop.xlane.xlu0 %1316 }
 0x766   : > { %v1328_v4 = vmul.f32 0.03125, %v1317_v20 }
 0x767   : > { %v1320_v5 = vpop.xlane.xlu1 %1319 }
 0x768   : > { %v4045_v6 = vsub.f32 %v1311_v59, %v1328_v4  ;;  %v1329_v21 = vmul.f32 0.03125, %v1320_v5 }
 0x769   : > { %v1323_v7 = vpop.xlane.xlu0 %1322 }
 0x76a   : > { %v4047_v22 = vsub.f32 %v1312_v62, %v1329_v21  ;;  %v1330_v8 = vmul.f32 0.03125, %v1323_v7  ;;  %v1336_v9 = vmul.f32 %v4045_v6, %v4045_v6 }
 0x76c   : > { %v4051_v10 = vsub.f32 %v1313_v63, %v1330_v8  ;;  %v1340_v24 = vsel %vm718_vm3, %v1336_v9, 0.0  ;;  %v1337_v48 = vmul.f32 %v4047_v22, %v4047_v22  ;;  %v4080_v63 = vsub.s32 1, %v4027_v31 }
 0x76d   : > { %1341 = vadd.xlane.f32.xlu1 %v1340_v24  ;;  %v1326_v11 = vpop.xlane.xlu0 %1325 }
 0x76e   : > { %v1331_v12 = vmul.f32 0.03125, %v1326_v11  ;;  %v1343_v13 = vsel %vm718_vm3, %v1337_v48, 0.0  ;;  %v1338_v47 = vmul.f32 %v4051_v10, %v4051_v10  ;;  %v1371_v1 = vrot.slane %v4033_v32, %v4080_v63 }
 0x76f   : > { %1344 = vadd.xlane.f32.xlu0 %v1343_v13  ;;  %v1411_v25 = vrot.slane %v1402_v40, %v4080_v63 }
 0x770   : > { %v4059_v14 = vsub.f32 %v1314_v2, %v1331_v12  ;;  %v1346_v15 = vsel %vm718_vm3, %v1338_v47, 0.0  ;;  %v4085_v2 = vsub.s32 2, %v4027_v31 }
 0x771   : > { %1347 = vadd.xlane.f32.xlu1 %v1346_v15 }
 0x772   : > { %v1339_v16 = vmul.f32 %v4059_v14, %v4059_v14  ;;  %v1379_v5 = vrot.slane %v4033_v32, %v4085_v2  ;;  %v1415_v26 = vrot.slane %v1402_v40, %v4085_v2 }
 0x774   : > { %v1349_v17 = vsel %vm718_vm3, %v1339_v16, 0.0  ;;  %v1604_v16 = vld [vmem:[%s3776_s25 + $0x80] sm:$0xff] }
 0x775   : > { %1350 = vadd.xlane.f32.xlu0 %v1349_v17  ;;  %v1606_v17 = vld [vmem:[%s3776_s25 + $0xc0] sm:$0xff] }
 0x776   : > { %v3142_v19 = vcombine.high %v1604_v16, %v1606_v17  ;;  %v3141_v27 = vcombine.low %v1604_v16, %v1606_v17 }
 0x7fa   : > { %v1342_v53 = vpop.xlane.xlu1 %1341 }
 0x7fb   : > { %v1352_v33 = vmul.f32 0.03125, %v1342_v53 }
 0x7fc   : > { %v1345_v54 = vpop.xlane.xlu0 %1344 }
 0x7fd   : > { %v1356_v55 = vadd.f32 1e-05, %v1352_v33  ;;  %v1353_v56 = vmul.f32 0.03125, %v1345_v54 }
 0x7fe   : > { %v1348_v57 = vpop.xlane.xlu1 %1347 }
 0x7ff   : > { %3518 = vrsqrt.f32 %v1356_v55  ;;  %v1357_v58 = vadd.f32 1e-05, %v1353_v56  ;;  %v1354_v59 = vmul.f32 0.03125, %v1348_v57 }
 0x801   : > { %3520 = vrsqrt.f32 %v1357_v58  ;;  %v1358_v60 = vadd.f32 1e-05, %v1354_v59 }
 0x802   : > { %v1351_v61 = vpop.xlane.xlu0 %1350 }
 0x803   : > { %3522 = vrsqrt.f32 %v1358_v60  ;;  %v1355_v62 = vmul.f32 0.03125, %v1351_v61 }
 0x805   : > { %v1359_v0 = vadd.f32 1e-05, %v1355_v62 }
 0x807   : > { %3524 = vrsqrt.f32 %v1359_v0 }
 0x809   : > { %v3519_v3 = vpop.eup %3518 }
 0x80a   : > { %v1364_v20 = vmul.f32 %v3519_v3, %v4045_v6 }
 0x80b   : > { %v3521_v4 = vpop.eup %3520 }
 0x80c   : > { %v1372_v21 = vmul.f32 %v1371_v1, %v1364_v20  ;;  %v1365_v7 = vmul.f32 %v3521_v4, %v4047_v22 }
 0x80d   : > { %v3523_v8 = vpop.eup %3522 }
 0x80e   : > { %v1373_v9 = vmul.f32 %v1371_v1, %v1365_v7  ;;  %v4091_v24 = vadd.f32 %v1379_v5, %v1372_v21  ;;  %v1366_v11 = vmul.f32 %v3523_v8, %v4051_v10  ;;  %v1756_v21 = vld [vmem:[%s3811_s19 + $0xd0] sm:$0xff] }
 0x810   : > { %v4093_v48 = vadd.f32 %v1379_v5, %v1373_v9  ;;  %v1374_v47 = vmul.f32 %v1371_v1, %v1366_v11 }
 0x811   : > { %v3525_v12 = vpop.eup %3524 }
 0x812   : > { %v4098_v6 = vpack.c.bf16 %v4093_v48, %v4091_v24  ;;  %v1367_v13 = vmul.f32 %v3525_v12, %v4059_v14  ;;  %v4109_v15 = vadd.f32 %v1379_v5, %v1374_v47 }
 0x814   : > { %v1375_v22 = vmul.f32 %v1371_v1, %v1367_v13  ;;  %3133 = vmatmul.mubr.msk.bf16.vlgmr.msra.gmra.mrb[12].mxu0 %vm718_vm3, %v4098_v6  ;;  %3135 = vmatmul.mubr.msk.bf16.vlgmr.msra.gmra.mrb[8].mxu1 %vm718_vm3, %v4098_v6 }
 0x815   : > { %1512 = vmatprep.mubr.bf16.mxu0 %v3611_v29  ;;  %1565 = vmatprep.mubr.bf16.mxu1 %v3611_v29 }
 0x816   : > { %v4107_v10 = vadd.f32 %v1379_v5, %v1375_v22  ;;  %1649 = vmatpush1.bf16.xpose.msra.mxu1 %v3137_v45  ;;  %1698 = vmatpush1.bf16.xpose.msra.mxu0 %v3139_v50  ;;  %v1754_v5 = vld [vmem:[%s3811_s19 + $0x90] sm:$0xff] }
 0x817   : > { %1650 = vmatprep.subr.bf16.mxu1 %v3142_v19  ;;  %1699 = vmatprep.subr.bf16.mxu0 %v3144_v35  ;;  %v3150_v18 = vcombine.high %v1754_v5, %v1756_v21  ;;  %v1751_v19 = vld [vmem:[%s3811_s19 + $0x18] sm:$0xff] }
 0x818   : > { %v4113_v14 = vpack.c.bf16 %v4107_v10, %v4109_v15 }
 0x81c   : > { %3134 = vmatmul.mubr.msk.bf16.gmra.mrb[16].mxu0 %vm718_vm3, %v4113_v14  ;;  %3136 = vmatmul.mubr.msk.bf16.gmra.mrb[12].mxu1 %vm718_vm3, %v4113_v14 }
 0x81e   : > { %1651 = vmatpush1.bf16.xpose.msra.mxu1 %v3141_v27  ;;  %1700 = vmatpush1.bf16.xpose.msra.mxu0 %v3143_v34 }
 0x81f   : > { %1820 = vmatprep.subr.bf16.mxu1 %v3146_v39 }
 0x8e7   : > { %v1504_v30 = vpop.f32.mrb[12].mxu0  ;;  %v1557_v43 = vpop.f32.mrb[8].mxu1 }
 0x8e8   : > { %v1505_v44 = vadd.f32 %v1504_v30, %v1407_v42  ;;  %v1558_v45 = vadd.f32 %v1557_v43, %v1415_v26  ;;  %v1506_v46 = vpop.f32.mrb[13].mxu0  ;;  %v1559_v49 = vpop.f32.mrb[9].mxu1 }
 0x8e9   : > { %v1507_v50 = vadd.f32 %v1506_v46, %v1411_v25  ;;  %v1560_v52 = vadd.f32 %v1559_v49, %v1419_v28  ;;  %v1508_v53 = vpop.f32.mrb[14].mxu0  ;;  %v1561_v33 = vpop.f32.mrb[10].mxu1  ;;  %v3148_v46 = vcombine.high %v1751_v19, %v1753_v23 }
 0x8ea   : > { %v1509_v54 = vadd.f32 %v1508_v53, %v1407_v42  ;;  %v1562_v55 = vadd.f32 %v1561_v33, %v1415_v26  ;;  %v1510_v56 = vpop.f32.mrb[15].mxu0  ;;  %v1563_v57 = vpop.f32.mrb[11].mxu1  ;;  %v1576_v60 = vmax.f32 %v1505_v44, 0.0  ;;  %v1578_v61 = vmax.f32 %v1558_v45, 0.0 }
 0x8eb   : > { %v1511_v58 = vadd.f32 %v1510_v56, %v1411_v25  ;;  %v1564_v59 = vadd.f32 %v1563_v57, %v1419_v28  ;;  %v1577_v1 = vmax.f32 %v1507_v50, 0.0  ;;  %v1579_v3 = vmax.f32 %v1560_v52, 0.0  ;;  %v1757_v57 = vld [vmem:[%s3811_s19 + $0xd8] sm:$0xff] }
 0x8ec   : > { %v1580_v62 = vmax.f32 %v1509_v54, 0.0  ;;  %v1582_v0 = vmax.f32 %v1562_v55, 0.0  ;;  %v3149_v45 = vcombine.low %v1754_v5, %v1756_v21  ;;  %v2101_v5 = vld [vmem:[%s3811_s19 + $0x28] sm:$0xff] }
 0x8ed   : > { %v1581_v20 = vmax.f32 %v1511_v58, 0.0  ;;  %v1583_v4 = vmax.f32 %v1564_v59, 0.0  ;;  %v3147_v58 = vcombine.low %v1751_v19, %v1753_v23  ;;  %v2103_v21 = vld [vmem:[%s3811_s19 + $0x68] sm:$0xff]  ;;  %v2456_v19 = vld [vmem:[%s3811_s19 + $0xf0] sm:$0xff] }
 0x8ee   : > { %v1592_v7 = vpack.c.bf16 %v1580_v62, %v1576_v60  ;;  %v1594_v8 = vpack.c.bf16 %v1582_v0, %v1578_v61  ;;  %v2100_v60 = vld [vmem:[%s3811_s19 + $0x20] sm:$0xff] }
 0x8ef   : > { %v1593_v9 = vpack.c.bf16 %v1581_v20, %v1577_v1  ;;  %v1595_v11 = vpack.c.bf16 %v1583_v4, %v1579_v3  ;;  %v1514_v12 = vpop.f32.mrb[16].mxu0  ;;  %v1567_v13 = vpop.f32.mrb[12].mxu1  ;;  %v2102_v61 = vld [vmem:[%s3811_s19 + $0x60] sm:$0xff] }
 0x8f0   : > { %v1515_v47 = vadd.f32 %v1514_v12, %v1407_v42  ;;  %v1568_v22 = vadd.f32 %v1567_v13, %v1415_v26  ;;  %v1516_v16 = vpop.f32.mrb[17].mxu0  ;;  %v1569_v17 = vpop.f32.mrb[13].mxu1  ;;  %v3166_v0 = vcombine.high %v2100_v60, %v2102_v61  ;;  %v2104_v1 = vld [vmem:[%s3811_s19 + $0xa0] sm:$0xff]  ;;  %v3165_v20 = vcombine.low %v2100_v60, %v2102_v61 }
 0x8f1   : > { %v1517_v27 = vadd.f32 %v1516_v16, %v1411_v25  ;;  %v1570_v34 = vadd.f32 %v1569_v17, %v1419_v28  ;;  %v1518_v35 = vpop.f32.mrb[18].mxu0  ;;  %v1571_v36 = vpop.f32.mrb[14].mxu1  ;;  %1680 = vmatprep.mubr.bf16.mxu1 %v1593_v9  ;;  %1729 = vmatprep.mubr.bf16.mxu0 %v1595_v11  ;;  %v2106_v3 = vld [vmem:[%s3811_s19 + $0xe0] sm:$0xff]  ;;  %v2105_v9 = vld [vmem:[%s3811_s19 + $0xa8] sm:$0xff]  ;;  %v3167_v12 = vcombine.low %v2101_v5, %v2103_v21 }
 0x8f2   : > { %v1519_v37 = vadd.f32 %v1518_v35, %v1407_v42  ;;  %v1572_v39 = vadd.f32 %v1571_v36, %v1415_v26  ;;  %v1520_v40 = vpop.f32.mrb[19].mxu0  ;;  %v1573_v30 = vpop.f32.mrb[15].mxu1  ;;  %1681 = vmatmul.mubr.bf16.vlgmr.msra.gmra.mrb[16].mxu1 %v1592_v7  ;;  %1730 = vmatmul.mubr.bf16.vlgmr.msra.gmra.mrb[20].mxu0 %v1594_v8  ;;  %v1584_v49 = vmax.f32 %v1515_v47, 0.0  ;;  %v1586_v50 = vmax.f32 %v1568_v22, 0.0  ;;  %v2107_v11 = vld [vmem:[%s3811_s19 + $0xe8] sm:$0xff]  ;;  %v2450_v47 = vld [vmem:[%s3811_s19 + $0x30] sm:$0xff] }
 0x8f3   : > { %v1521_v43 = vadd.f32 %v1520_v40, %v1411_v25  ;;  %v1574_v44 = vadd.f32 %v1573_v30, %v1419_v28  ;;  %1821 = vmatpush1.bf16.msra.mxu1 %v3145_v38  ;;  %v1585_v33 = vmax.f32 %v1517_v27, 0.0  ;;  %v1587_v54 = vmax.f32 %v1570_v34, 0.0  ;;  %v1755_v38 = vld [vmem:[%s3811_s19 + $0x98] sm:$0xff]  ;;  %v2452_v22 = vld [vmem:[%s3811_s19 + $0x70] sm:$0xff] }
 0x8f4   : > { %v1588_v52 = vmax.f32 %v1519_v37, 0.0  ;;  %v1590_v53 = vmax.f32 %v1572_v39, 0.0  ;;  %1822 = vmatprep.subr.bf16.mxu1 %v3150_v18  ;;  %v3152_v59 = vcombine.high %v1755_v38, %v1757_v57  ;;  %v3151_v62 = vcombine.low %v1755_v38, %v1757_v57  ;;  %v2454_v18 = vld [vmem:[%s3811_s19 + $0xb0] sm:$0xff]  ;;  %v2451_v34 = vld [vmem:[%s3811_s19 + $0x38] sm:$0xff] }
 0x8f5   : > { %v1589_v42 = vmax.f32 %v1521_v43, 0.0  ;;  %v1591_v26 = vmax.f32 %v1574_v44, 0.0  ;;  %v3170_v4 = vcombine.high %v2104_v1, %v2106_v3  ;;  %v3169_v7 = vcombine.low %v2104_v1, %v2106_v3  ;;  %v2453_v35 = vld [vmem:[%s3811_s19 + $0x78] sm:$0xff] }
 0x8f6   : > { %v1596_v55 = vpack.c.bf16 %v1588_v52, %v1584_v49  ;;  %v1598_v56 = vpack.c.bf16 %v1590_v53, %v1586_v50  ;;  %v3168_v8 = vcombine.high %v2101_v5, %v2103_v21  ;;  %v3172_v13 = vcombine.high %v2105_v9, %v2107_v11  ;;  %v2455_v39 = vld [vmem:[%s3811_s19 + $0xb8] sm:$0xff]  ;;  %v1954_v52 = vld [vmem:[%s3776_s25 + $0x90] sm:$0xff] }
 0x8f7   : > { %v1597_v25 = vpack.c.bf16 %v1589_v42, %v1585_v33  ;;  %v1599_v28 = vpack.c.bf16 %v1591_v26, %v1587_v54  ;;  %1823 = vmatpush1.bf16.msra.mxu1 %v3149_v45  ;;  %v3171_v16 = vcombine.low %v2105_v9, %v2107_v11  ;;  %v3186_v17 = vcombine.high %v2450_v47, %v2452_v22  ;;  %v2457_v40 = vld [vmem:[%s3811_s19 + $0xf8] sm:$0xff]  ;;  %v1950_v45 = vld [vmem:[%s3776_s25 + $0x10] sm:$0xff]  ;;  %s4326_s19 = sld [smem:[#allocation12_spill]] (!%p3205_p8) }
 0x8f8   : > { %1873 = vmatprep.subr.bf16.mxu1 %v3148_v46  ;;  %v3185_v23 = vcombine.low %v2450_v47, %v2452_v22  ;;  %v3190_v27 = vcombine.high %v2454_v18, %v2456_v19  ;;  %v3189_v36 = vcombine.low %v2454_v18, %v2456_v19  ;;  %v3188_v37 = vcombine.high %v2451_v34, %v2453_v35  ;;  %v1952_v46 = vld [vmem:[%s3776_s25 + $0x50] sm:$0xff]  ;;  %v1951_v42 = vld [vmem:[%s3776_s25 + $0x18] sm:$0xff] }
 0x8f9   : > { %1688 = vmatprep.mubr.bf16.mxu1 %v1597_v25  ;;  %1737 = vmatprep.mubr.bf16.mxu0 %v1599_v28  ;;  %v3187_v30 = vcombine.low %v2451_v34, %v2453_v35  ;;  %v3192_v43 = vcombine.high %v2455_v39, %v2457_v40  ;;  %v3191_v44 = vcombine.low %v2455_v39, %v2457_v40  ;;  %v1956_v53 = vld [vmem:[%s3776_s25 + $0xd0] sm:$0xff]  ;;  %v1953_v26 = vld [vmem:[%s3776_s25 + $0x58] sm:$0xff] }
 0x8fa   : > { %1689 = vmatmul.mubr.bf16.gmra.mrb[20].mxu1 %v1596_v55  ;;  %1738 = vmatmul.mubr.bf16.gmra.mrb[24].mxu0 %v1598_v56  ;;  %v3158_v49 = vcombine.high %v1950_v45, %v1952_v46  ;;  %v3157_v50 = vcombine.low %v1950_v45, %v1952_v46  ;;  %v3162_v33 = vcombine.high %v1954_v52, %v1956_v53 }
 0x8fb   : > { %1852 = vmatprep.mubr.bf16.mxu1 %v3611_v29  ;;  %v3161_v54 = vcombine.low %v1954_v52, %v1956_v53  ;;  %v3160_v55 = vcombine.high %v1951_v42, %v1953_v26  ;;  %v3159_v56 = vcombine.low %v1951_v42, %v1953_v26  ;;  %v2300_v52 = vld [vmem:[%s3776_s25 + $0x20] sm:$0xff] }
 0x8fc   : > { %1998 = vmatprep.subr.bf16.mxu0 %v3158_v49  ;;  %v2302_v53 = vld [vmem:[%s3776_s25 + $0x60] sm:$0xff] }
 0x8fd   : > { %1999 = vmatpush1.bf16.xpose.msra.mxu0 %v3157_v50 }
 0x8fe   : > { %2000 = vmatprep.subr.bf16.mxu0 %v3162_v33 }
 0x902   : > { %3153 = vmatmul.mubr.msk.bf16.vlgmr.msra.gmra.mrb[24].mxu1 %vm718_vm3, %v4098_v6 }
 0x903   : > { %1874 = vmatpush1.bf16.msra.mxu1 %v3147_v58  ;;  %1862 = vmatprep.mubr.bf16.mxu1 %v3611_v29 }
 0x904   : > { %1875 = vmatprep.subr.bf16.mxu1 %v3152_v59 }
 0x905   : > { %2001 = vmatpush1.bf16.xpose.msra.mxu0 %v3161_v54 }
 0x906   : > { %2047 = vmatprep.subr.bf16.mxu0 %v3160_v55 }
 0x907   : > { %1876 = vmatpush1.bf16.msra.mxu1 %v3151_v62 }
 0x908   : > { %2170 = vmatprep.subr.bf16.mxu1 %v3166_v0 }
 0x90a   : > { %3154 = vmatmul.mubr.msk.bf16.gmra.mrb[28].mxu1 %vm718_vm3, %v4113_v14 }
 0x90b   : > { %1905 = vmatprep.mubr.bf16.mxu1 %v3611_v29 }
 0x912   : > { %3155 = vmatmul.mubr.msk.bf16.vlgmr.msra.gmra.mrb[32].mxu1 %vm718_vm3, %v4098_v6 }
 0x913   : > { %2171 = vmatpush1.bf16.msra.mxu1 %v3165_v20  ;;  %1915 = vmatprep.mubr.bf16.mxu1 %v3611_v29 }
 0x914   : > { %2172 = vmatprep.subr.bf16.mxu1 %v3170_v4 }
 0x917   : > { %2173 = vmatpush1.bf16.msra.mxu1 %v3169_v7 }
 0x918   : > { %2223 = vmatprep.subr.bf16.mxu1 %v3168_v8 }
 0x91a   : > { %3156 = vmatmul.mubr.msk.bf16.gmra.mrb[36].mxu1 %vm718_vm3, %v4113_v14 }
 0x91b   : > { %2202 = vmatprep.mubr.bf16.mxu1 %v3611_v29 }
 0x922   : > { %3173 = vmatmul.mubr.msk.bf16.vlgmr.msra.gmra.mrb[40].mxu1 %vm718_vm3, %v4098_v6 }
 0x923   : > { %2224 = vmatpush1.bf16.msra.mxu1 %v3167_v12  ;;  %2212 = vmatprep.mubr.bf16.mxu1 %v3611_v29 }
 0x924   : > { %2225 = vmatprep.subr.bf16.mxu1 %v3172_v13 }
 0x927   : > { %2226 = vmatpush1.bf16.msra.mxu1 %v3171_v16  ;;  %v1955_v16 = vld [vmem:[%s3776_s25 + $0x98] sm:$0xff] }
 0x928   : > { %2520 = vmatprep.subr.bf16.mxu1 %v3186_v17  ;;  %v1957_v17 = vld [vmem:[%s3776_s25 + $0xd8] sm:$0xff] }
 0x929   : > { %v3164_v35 = vcombine.high %v1955_v16, %v1957_v17  ;;  %v3163_v26 = vcombine.low %v1955_v16, %v1957_v17 }
 0x92a   : > { %3174 = vmatmul.mubr.msk.bf16.gmra.mrb[44].mxu1 %vm718_vm3, %v4113_v14 }
 0x92b   : > { %2255 = vmatprep.mubr.bf16.mxu1 %v3611_v29 }
 0x932   : > { %3175 = vmatmul.mubr.msk.bf16.vlgmr.msra.gmra.mrb[48].mxu1 %vm718_vm3, %v4098_v6 }
 0x933   : > { %2521 = vmatpush1.bf16.msra.mxu1 %v3185_v23  ;;  %2265 = vmatprep.mubr.bf16.mxu1 %v3611_v29 }
 0x934   : > { %2522 = vmatprep.subr.bf16.mxu1 %v3190_v27 }
 0x937   : > { %2523 = vmatpush1.bf16.msra.mxu1 %v3189_v36 }
 0x938   : > { %2573 = vmatprep.subr.bf16.mxu1 %v3188_v37 }
 0x93a   : > { %3176 = vmatmul.mubr.msk.bf16.gmra.mrb[52].mxu1 %vm718_vm3, %v4113_v14 }
 0x93b   : > { %2552 = vmatprep.mubr.bf16.mxu1 %v3611_v29 }
 0x942   : > { %3193 = vmatmul.mubr.msk.bf16.vlgmr.msra.gmra.mrb[56].mxu1 %vm718_vm3, %v4098_v6 }
 0x943   : > { %2574 = vmatpush1.bf16.msra.mxu1 %v3187_v30  ;;  %2562 = vmatprep.mubr.bf16.mxu1 %v3611_v29 }
 0x944   : > { %2575 = vmatprep.subr.bf16.mxu1 %v3192_v43 }
 0x947   : > { %2576 = vmatpush1.bf16.msra.mxu1 %v3191_v44 }
 0x94a   : > { %3194 = vmatmul.mubr.msk.bf16.gmra.mrb[60].mxu1 %vm718_vm3, %v4113_v14 }
 0x94b   : > { %2605 = vmatprep.mubr.bf16.mxu1 %v3611_v29 }
 0x952   : > { %3195 = vmatmul.mubr.msk.bf16.vlgmr.msra.gmra.mrb[64].mxu1 %vm718_vm3, %v4098_v6  ;;  %v1389_v6 = vrot.slane %v4033_v32, %v4135_v41 }
 0x953   : > { %2615 = vmatprep.mubr.bf16.mxu1 %v3611_v29 }
 0x954   : > { %v1390_v29 = vadd.f32 %v1389_v6, %v4091_v24  ;;  %v1391_v57 = vadd.f32 %v1389_v6, %v4093_v48  ;;  %v1392_v60 = vadd.f32 %v1389_v6, %v4109_v15  ;;  %v1393_v32 = vadd.f32 %v1389_v6, %v4107_v10  ;;  %v1758_v24 = vld [vmem:[%s3816_s20 + $0x4] sm:$0xf] }
 0x955   : > { %v1763_v48 = vrot.slane %v1758_v24, %v4030_v51  ;;  %v1767_v4 = vrot.slane %v1758_v24, %v4080_v63  ;;  %v1771_v45 = vrot.slane %v1758_v24, %v4085_v2  ;;  %v1775_v50 = vrot.slane %v1758_v24, %v4135_v41 }
 0x95a   : > { %3196 = vmatmul.mubr.msk.bf16.gmra.mrb[68].mxu1 %vm718_vm3, %v4113_v14 }
 0x9c5   : > { %v1682_v25 = vpop.f32.mrb[16].mxu1 }
 0x9c6   : > { %v4208_v28 = vadd.f32 %v1682_v25, %v1390_v29  ;;  %v1684_v38 = vpop.f32.mrb[17].mxu1 }
 0x9c7   : > { %v1685_v58 = vpop.f32.mrb[18].mxu1 }
 0x9c8   : > { %v4211_v59 = vadd.f32 %v1685_v58, %v1391_v57  ;;  %v1687_v14 = vpop.f32.mrb[19].mxu1 }
 0x9cd   : > { %v1690_v61 = vpop.f32.mrb[20].mxu1 }
 0x9ce   : > { %v4214_v62 = vadd.f32 %v1690_v61, %v1392_v60  ;;  %v1692_v0 = vpop.f32.mrb[21].mxu1 }
 0x9cf   : > { %v1693_v1 = vpop.f32.mrb[22].mxu1 }
 0x9d0   : > { %v4218_v3 = vadd.f32 %v1693_v1, %v1393_v32  ;;  %v1695_v20 = vpop.f32.mrb[23].mxu1  ;;  %v2304_v32 = vld [vmem:[%s3776_s25 + $0xa0] sm:$0xff] }
 0x9d1   : > { %v2306_v1 = vld [vmem:[%s3776_s25 + $0xe0] sm:$0xff] }
 0x9d5   : > { %v1854_v5 = vpop.f32.mrb[24].mxu1 }
 0x9d6   : > { %v1855_v21 = vadd.f32 %v1854_v5, %v1763_v48  ;;  %v1856_v15 = vpop.f32.mrb[25].mxu1 }
 0x9d7   : > { %v1857_v7 = vadd.f32 %v1856_v15, %v1767_v4  ;;  %v1858_v8 = vpop.f32.mrb[26].mxu1  ;;  %v3182_v15 = vcombine.high %v2304_v32, %v2306_v1 }
 0x9d8   : > { %v1859_v9 = vadd.f32 %v1858_v8, %v1763_v48  ;;  %v1860_v11 = vpop.f32.mrb[27].mxu1  ;;  %v1926_v10 = vmax.f32 %v1855_v21, 0.0 }
 0x9d9   : > { %v1861_v12 = vadd.f32 %v1860_v11, %v1767_v4  ;;  %v1927_v47 = vmax.f32 %v1857_v7, 0.0 }
 0x9da   : > { %v1930_v13 = vmax.f32 %v1859_v9, 0.0  ;;  %v2108_v9 = vld [vmem:[%s3816_s20 + $0x8] sm:$0xf] }
 0x9db   : > { %v1931_v22 = vmax.f32 %v1861_v12, 0.0 }
 0x9dc   : > { %v1942_v18 = vpack.c.bf16 %v1930_v13, %v1926_v10 }
 0x9dd   : > { %v1943_v19 = vpack.c.bf16 %v1931_v22, %v1927_v47  ;;  %v1864_v23 = vpop.f32.mrb[28].mxu1  ;;  %v2113_v22 = vrot.slane %v2108_v9, %v4030_v51 }
 0x9de   : > { %v1865_v27 = vadd.f32 %v1864_v23, %v1763_v48  ;;  %v1866_v34 = vpop.f32.mrb[29].mxu1  ;;  %v2303_v23 = vld [vmem:[%s3776_s25 + $0x68] sm:$0xff] }
 0x9df   : > { %v1867_v36 = vadd.f32 %v1866_v34, %v1767_v4  ;;  %v1868_v37 = vpop.f32.mrb[30].mxu1  ;;  %2030 = vmatprep.mubr.bf16.mxu0 %v1943_v19  ;;  %v2301_v19 = vld [vmem:[%s3776_s25 + $0x28] sm:$0xff] }
 0x9e0   : > { %v1869_v39 = vadd.f32 %v1868_v37, %v1763_v48  ;;  %v1870_v40 = vpop.f32.mrb[31].mxu1  ;;  %2031 = vmatmul.mubr.bf16.vlgmr.msra.gmra.mrb[20].mxu0 %v1942_v18  ;;  %v1934_v43 = vmax.f32 %v1865_v27, 0.0  ;;  %v2117_v18 = vrot.slane %v2108_v9, %v4080_v63 }
 0x9e1   : > { %v1871_v30 = vadd.f32 %v1870_v40, %v1767_v4  ;;  %2048 = vmatpush1.bf16.xpose.msra.mxu0 %v3159_v56  ;;  %v1935_v46 = vmax.f32 %v1867_v36, 0.0  ;;  %v3178_v56 = vcombine.high %v2300_v52, %v2302_v53  ;;  %v3177_v4 = vcombine.low %v2300_v52, %v2302_v53 }
 0x9e2   : > { %v1938_v44 = vmax.f32 %v1869_v39, 0.0  ;;  %2049 = vmatprep.subr.bf16.mxu0 %v3164_v35  ;;  %v3181_v36 = vcombine.low %v2304_v32, %v2306_v1  ;;  %v3180_v40 = vcombine.high %v2301_v19, %v2303_v23  ;;  %v2121_v32 = vrot.slane %v2108_v9, %v4085_v2 }
 0x9e3   : > { %v1939_v49 = vmax.f32 %v1871_v30, 0.0 }
 0x9e4   : > { %v1946_v33 = vpack.c.bf16 %v1938_v44, %v1934_v43 }
 0x9e5   : > { %v1947_v54 = vpack.c.bf16 %v1939_v49, %v1935_v46  ;;  %v1907_v42 = vpop.f32.mrb[32].mxu1 }
 0x9e6   : > { %v1908_v55 = vadd.f32 %v1907_v42, %v1771_v45  ;;  %v1909_v6 = vpop.f32.mrb[33].mxu1 }
 0x9e7   : > { %v1910_v29 = vadd.f32 %v1909_v6, %v1775_v50  ;;  %v1911_v25 = vpop.f32.mrb[34].mxu1  ;;  %2038 = vmatprep.mubr.bf16.mxu0 %v1947_v54  ;;  %v2307_v54 = vld [vmem:[%s3776_s25 + $0xe8] sm:$0xff]  ;;  %v3179_v6 = vcombine.low %v2301_v19, %v2303_v23  ;;  %v2654_v23 = vld [vmem:[%s3776_s25 + $0xb0] sm:$0xff] }
 0x9e8   : > { %v1912_v38 = vadd.f32 %v1911_v25, %v1771_v45  ;;  %v1913_v57 = vpop.f32.mrb[35].mxu1  ;;  %2039 = vmatmul.mubr.bf16.gmra.mrb[24].mxu0 %v1946_v33  ;;  %v1928_v14 = vmax.f32 %v1908_v55, 0.0  ;;  %v2305_v33 = vld [vmem:[%s3776_s25 + $0xa8] sm:$0xff] }
 0x9e9   : > { %v1914_v58 = vadd.f32 %v1913_v57, %v1775_v50  ;;  %2050 = vmatpush1.bf16.xpose.msra.mxu0 %v3163_v26  ;;  %v1929_v61 = vmax.f32 %v1910_v29, 0.0  ;;  %v3184_v25 = vcombine.high %v2305_v33, %v2307_v54 }
 0x9ea   : > { %v1932_v60 = vmax.f32 %v1912_v38, 0.0  ;;  %2348 = vmatprep.subr.bf16.mxu0 %v3178_v56 }
 0x9eb   : > { %v1933_v0 = vmax.f32 %v1914_v58, 0.0 }
 0x9ec   : > { %v1944_v24 = vpack.c.bf16 %v1932_v60, %v1928_v14 }
 0x9ed   : > { %v1945_v20 = vpack.c.bf16 %v1933_v0, %v1929_v61  ;;  %v1917_v48 = vpop.f32.mrb[36].mxu1 }
 0x9ee   : > { %v1918_v5 = vadd.f32 %v1917_v48, %v1771_v45  ;;  %v1919_v21 = vpop.f32.mrb[37].mxu1  ;;  %v2650_v48 = vld [vmem:[%s3776_s25 + $0x30] sm:$0xff] }
 0x9ef   : > { %v1920_v7 = vadd.f32 %v1919_v21, %v1775_v50  ;;  %v1921_v8 = vpop.f32.mrb[38].mxu1  ;;  %2079 = vmatprep.mubr.bf16.mxu0 %v1945_v20  ;;  %v2125_v20 = vrot.slane %v2108_v9, %v4135_v41 }
 0x9f0   : > { %v1922_v11 = vadd.f32 %v1921_v8, %v1771_v45  ;;  %v1923_v12 = vpop.f32.mrb[39].mxu1  ;;  %2080 = vmatmul.mubr.bf16.vlgmr.msra.gmra.mrb[20].mxu0 %v1944_v24  ;;  %v1936_v13 = vmax.f32 %v1918_v5, 0.0 }
 0x9f1   : > { %v1924_v10 = vadd.f32 %v1923_v12, %v1775_v50  ;;  %2349 = vmatpush1.bf16.xpose.msra.mxu0 %v3177_v4  ;;  %v1937_v16 = vmax.f32 %v1920_v7, 0.0  ;;  %v2652_v4 = vld [vmem:[%s3776_s25 + $0x70] sm:$0xff]  ;;  %v3183_v7 = vcombine.low %v2305_v33, %v2307_v54 }
 0x9f2   : > { %v1940_v47 = vmax.f32 %v1922_v11, 0.0  ;;  %2350 = vmatprep.subr.bf16.mxu0 %v3182_v15  ;;  %v3198_v12 = vcombine.high %v2650_v48, %v2652_v4 }
 0x9f3   : > { %v1941_v17 = vmax.f32 %v1924_v10, 0.0 }
 0x9f4   : > { %v1948_v27 = vpack.c.bf16 %v1940_v47, %v1936_v13 }
 0x9f5   : > { %v1949_v34 = vpack.c.bf16 %v1941_v17, %v1937_v16  ;;  %v2204_v35 = vpop.f32.mrb[40].mxu1 }
 0x9f6   : > { %v2205_v37 = vadd.f32 %v2204_v35, %v2113_v22  ;;  %v2206_v39 = vpop.f32.mrb[41].mxu1 }
 0x9f7   : > { %v2207_v30 = vadd.f32 %v2206_v39, %v2117_v18  ;;  %2087 = vmatprep.mubr.bf16.mxu0 %v1949_v34  ;;  %v2208_v43 = vpop.f32.mrb[42].mxu1 }
 0x9f8   : > { %v2209_v44 = vadd.f32 %v2208_v43, %v2113_v22  ;;  %2088 = vmatmul.mubr.bf16.gmra.mrb[24].mxu0 %v1948_v27  ;;  %v2210_v45 = vpop.f32.mrb[43].mxu1  ;;  %v2276_v49 = vmax.f32 %v2205_v37, 0.0  ;;  %v2656_v27 = vld [vmem:[%s3776_s25 + $0xf0] sm:$0xff]  ;;  %v3197_v37 = vcombine.low %v2650_v48, %v2652_v4  ;;  %v2655_v48 = vld [vmem:[%s3776_s25 + $0xb8] sm:$0xff] }
 0x9f9   : > { %v2211_v46 = vadd.f32 %v2210_v45, %v2117_v18  ;;  %2351 = vmatpush1.bf16.xpose.msra.mxu0 %v3181_v36  ;;  %v2277_v52 = vmax.f32 %v2207_v30, 0.0  ;;  %v3202_v30 = vcombine.high %v2654_v23, %v2656_v27  ;;  %v2458_v45 = vld [vmem:[%s3816_s20 + $0xc] sm:$0xf]  ;;  %v2657_v4 = vld [vmem:[%s3776_s25 + $0xf8] sm:$0xff]  ;;  %s4325_s20 = sld [smem:[#allocation10_spill]] (!%p3205_p8) }
 0x9fa   : > { %v2280_v50 = vmax.f32 %v2209_v44, 0.0  ;;  %2397 = vmatprep.subr.bf16.mxu0 %v3180_v40  ;;  %v2463_v33 = vrot.slane %v2458_v45, %v4030_v51 }
 0x9fb   : > { %v2281_v53 = vmax.f32 %v2211_v46, 0.0 }
 0x9fc   : > { %v2292_v42 = vpack.c.bf16 %v2280_v50, %v2276_v49 }
 0x9fd   : > { %v2293_v26 = vpack.c.bf16 %v2281_v53, %v2277_v52  ;;  %v2214_v55 = vpop.f32.mrb[44].mxu1 }
 0x9fe   : > { %v2215_v56 = vadd.f32 %v2214_v55, %v2113_v22  ;;  %v2216_v29 = vpop.f32.mrb[45].mxu1  ;;  %v2651_v55 = vld [vmem:[%s3776_s25 + $0x38] sm:$0xff] }
 0x9ff   : > { %v2217_v38 = vadd.f32 %v2216_v29, %v2117_v18  ;;  %v2218_v57 = vpop.f32.mrb[46].mxu1  ;;  %2380 = vmatprep.mubr.bf16.mxu0 %v2293_v26  ;;  %v2467_v26 = vrot.slane %v2458_v45, %v4080_v63 }
 0xa00   : > { %v2219_v58 = vadd.f32 %v2218_v57, %v2113_v22  ;;  %v2220_v14 = vpop.f32.mrb[47].mxu1  ;;  %2381 = vmatmul.mubr.bf16.vlgmr.msra.gmra.mrb[20].mxu0 %v2292_v42  ;;  %v2284_v61 = vmax.f32 %v2215_v56, 0.0 }
 0xa01   : > { %v2221_v60 = vadd.f32 %v2220_v14, %v2117_v18  ;;  %2398 = vmatpush1.bf16.xpose.msra.mxu0 %v3179_v6  ;;  %v2285_v1 = vmax.f32 %v2217_v38, 0.0  ;;  %v2653_v6 = vld [vmem:[%s3776_s25 + $0x78] sm:$0xff]  ;;  %v3201_v38 = vcombine.low %v2654_v23, %v2656_v27  ;;  %v2475_v27 = vrot.slane %v2458_v45, %v4135_v41 }
 0xa02   : > { %v2288_v0 = vmax.f32 %v2219_v58, 0.0  ;;  %2399 = vmatprep.subr.bf16.mxu0 %v3184_v25  ;;  %v3200_v14 = vcombine.high %v2651_v55, %v2653_v6 }
 0xa03   : > { %v2289_v24 = vmax.f32 %v2221_v60, 0.0 }
 0xa04   : > { %v2296_v5 = vpack.c.bf16 %v2288_v0, %v2284_v61 }
 0xa05   : > { %v2297_v21 = vpack.c.bf16 %v2289_v24, %v2285_v1  ;;  %v2257_v15 = vpop.f32.mrb[48].mxu1 }
 0xa06   : > { %v2258_v8 = vadd.f32 %v2257_v15, %v2121_v32  ;;  %v2259_v11 = vpop.f32.mrb[49].mxu1 }
 0xa07   : > { %v2260_v10 = vadd.f32 %v2259_v11, %v2125_v20  ;;  %v2261_v13 = vpop.f32.mrb[50].mxu1  ;;  %2388 = vmatprep.mubr.bf16.mxu0 %v2297_v21 }
 0xa08   : > { %v2262_v47 = vadd.f32 %v2261_v13, %v2121_v32  ;;  %v2263_v22 = vpop.f32.mrb[51].mxu1  ;;  %2389 = vmatmul.mubr.bf16.gmra.mrb[24].mxu0 %v2296_v5  ;;  %v2278_v9 = vmax.f32 %v2258_v8, 0.0 }
 0xa09   : > { %v2264_v16 = vadd.f32 %v2263_v22, %v2125_v20  ;;  %2400 = vmatpush1.bf16.xpose.msra.mxu0 %v3183_v7  ;;  %v2279_v18 = vmax.f32 %v2260_v10, 0.0  ;;  %v3199_v7 = vcombine.low %v2651_v55, %v2653_v6 }
 0xa0a   : > { %v2282_v17 = vmax.f32 %v2262_v47, 0.0  ;;  %2698 = vmatprep.subr.bf16.mxu0 %v3198_v12  ;;  %v3204_v12 = vcombine.high %v2655_v48, %v2657_v4 }
 0xa0b   : > { %v2283_v19 = vmax.f32 %v2264_v16, 0.0 }
 0xa0c   : > { %v2294_v34 = vpack.c.bf16 %v2282_v17, %v2278_v9 }
 0xa0d   : > { %v2295_v35 = vpack.c.bf16 %v2283_v19, %v2279_v18  ;;  %v2267_v36 = vpop.f32.mrb[52].mxu1  ;;  %v2471_v18 = vrot.slane %v2458_v45, %v4085_v2 }
 0xa0e   : > { %v2268_v39 = vadd.f32 %v2267_v36, %v2121_v32  ;;  %v2269_v40 = vpop.f32.mrb[53].mxu1 }
 0xa0f   : > { %v2270_v43 = vadd.f32 %v2269_v40, %v2125_v20  ;;  %v2271_v44 = vpop.f32.mrb[54].mxu1  ;;  %2429 = vmatprep.mubr.bf16.mxu0 %v2295_v35 }
 0xa10   : > { %v2272_v46 = vadd.f32 %v2271_v44, %v2121_v32  ;;  %v2273_v49 = vpop.f32.mrb[55].mxu1  ;;  %2430 = vmatmul.mubr.bf16.vlgmr.msra.gmra.mrb[20].mxu0 %v2294_v34  ;;  %v2286_v52 = vmax.f32 %v2268_v39, 0.0 }
 0xa11   : > { %v2274_v50 = vadd.f32 %v2273_v49, %v2125_v20  ;;  %2699 = vmatpush1.bf16.xpose.msra.mxu0 %v3197_v37  ;;  %v2287_v54 = vmax.f32 %v2270_v43, 0.0  ;;  %v3203_v37 = vcombine.low %v2655_v48, %v2657_v4 }
 0xa12   : > { %v2290_v53 = vmax.f32 %v2272_v46, 0.0  ;;  %2700 = vmatprep.subr.bf16.mxu0 %v3202_v30 }
 0xa13   : > { %v2291_v42 = vmax.f32 %v2274_v50, 0.0 }
 0xa14   : > { %v2298_v56 = vpack.c.bf16 %v2290_v53, %v2286_v52 }
 0xa15   : > { %v2299_v29 = vpack.c.bf16 %v2291_v42, %v2287_v54  ;;  %v2554_v25 = vpop.f32.mrb[56].mxu1 }
 0xa16   : > { %v2555_v57 = vadd.f32 %v2554_v25, %v2463_v33  ;;  %v2556_v58 = vpop.f32.mrb[57].mxu1 }
 0xa17   : > { %v2557_v60 = vadd.f32 %v2556_v58, %v2467_v26  ;;  %2437 = vmatprep.mubr.bf16.mxu0 %v2299_v29  ;;  %v2558_v61 = vpop.f32.mrb[58].mxu1 }
 0xa18   : > { %v2559_v51 = vadd.f32 %v2558_v61, %v2463_v33  ;;  %2438 = vmatmul.mubr.bf16.gmra.mrb[24].mxu0 %v2298_v56  ;;  %v2560_v0 = vpop.f32.mrb[59].mxu1  ;;  %v2626_v63 = vmax.f32 %v2555_v57, 0.0 }
 0xa19   : > { %v2561_v32 = vadd.f32 %v2560_v0, %v2467_v26  ;;  %2701 = vmatpush1.bf16.xpose.msra.mxu0 %v3201_v38  ;;  %v2627_v24 = vmax.f32 %v2557_v60, 0.0 }
 0xa1a   : > { %v2630_v1 = vmax.f32 %v2559_v51, 0.0  ;;  %2747 = vmatprep.subr.bf16.mxu0 %v3200_v14 }
 0xa1b   : > { %v2631_v20 = vmax.f32 %v2561_v32, 0.0 }
 0xa1c   : > { %v2642_v5 = vpack.c.bf16 %v2630_v1, %v2626_v63 }
 0xa1d   : > { %v2643_v21 = vpack.c.bf16 %v2631_v20, %v2627_v24  ;;  %v2564_v15 = vpop.f32.mrb[60].mxu1 }
 0xa1e   : > { %v2565_v8 = vadd.f32 %v2564_v15, %v2463_v33  ;;  %v2566_v11 = vpop.f32.mrb[61].mxu1 }
 0xa1f   : > { %v2567_v10 = vadd.f32 %v2566_v11, %v2467_v26  ;;  %v2568_v13 = vpop.f32.mrb[62].mxu1  ;;  %2730 = vmatprep.mubr.bf16.mxu0 %v2643_v21 }
 0xa20   : > { %v2569_v47 = vadd.f32 %v2568_v13, %v2463_v33  ;;  %v2570_v22 = vpop.f32.mrb[63].mxu1  ;;  %2731 = vmatmul.mubr.bf16.vlgmr.msra.gmra.mrb[20].mxu0 %v2642_v5  ;;  %v2634_v9 = vmax.f32 %v2565_v8, 0.0 }
 0xa21   : > { %v2571_v16 = vadd.f32 %v2570_v22, %v2467_v26  ;;  %2748 = vmatpush1.bf16.xpose.msra.mxu0 %v3199_v7  ;;  %v2635_v19 = vmax.f32 %v2567_v10, 0.0 }
 0xa22   : > { %v2638_v17 = vmax.f32 %v2569_v47, 0.0  ;;  %2749 = vmatprep.subr.bf16.mxu0 %v3204_v12 }
 0xa23   : > { %v2639_v23 = vmax.f32 %v2571_v16, 0.0 }
 0xa24   : > { %v2646_v34 = vpack.c.bf16 %v2638_v17, %v2634_v9 }
 0xa25   : > { %v2647_v35 = vpack.c.bf16 %v2639_v23, %v2635_v19  ;;  %v2607_v36 = vpop.f32.mrb[64].mxu1 }
 0xa26   : > { %v2608_v39 = vadd.f32 %v2607_v36, %v2471_v18  ;;  %v2609_v40 = vpop.f32.mrb[65].mxu1 }
 0xa27   : > { %v2610_v30 = vadd.f32 %v2609_v40, %v2475_v27  ;;  %v2611_v43 = vpop.f32.mrb[66].mxu1  ;;  %2738 = vmatprep.mubr.bf16.mxu0 %v2647_v35 }
 0xa28   : > { %v2612_v44 = vadd.f32 %v2611_v43, %v2471_v18  ;;  %v2613_v46 = vpop.f32.mrb[67].mxu1  ;;  %2739 = vmatmul.mubr.bf16.gmra.mrb[24].mxu0 %v2646_v34  ;;  %v2628_v2 = vmax.f32 %v2608_v39, 0.0 }
 0xa29   : > { %v2614_v49 = vadd.f32 %v2613_v46, %v2475_v27  ;;  %2750 = vmatpush1.bf16.xpose.msra.mxu0 %v3203_v37  ;;  %v2629_v52 = vmax.f32 %v2610_v30, 0.0 }
 0xa2a   : > { %v2632_v50 = vmax.f32 %v2612_v44, 0.0 }
 0xa2b   : > { %v2633_v53 = vmax.f32 %v2614_v49, 0.0 }
 0xa2c   : > { %v2644_v33 = vpack.c.bf16 %v2632_v50, %v2628_v2  ;;  %v2854_v50 = vsub.s32 4, %v4027_v31 }
 0xa2d   : > { %v2645_v41 = vpack.c.bf16 %v2633_v53, %v2629_v52  ;;  %v2617_v45 = vpop.f32.mrb[68].mxu1 }
 0xa2e   : > { %v2618_v54 = vadd.f32 %v2617_v45, %v2471_v18  ;;  %v2619_v42 = vpop.f32.mrb[69].mxu1 }
 0xa2f   : > { %v2620_v26 = vadd.f32 %v2619_v42, %v2475_v27  ;;  %v2621_v55 = vpop.f32.mrb[70].mxu1  ;;  %2779 = vmatprep.mubr.bf16.mxu0 %v2645_v41  ;;  %v2862_v41 = vsub.s32 5, %v4027_v31 }
 0xa30   : > { %v2622_v6 = vadd.f32 %v2621_v55, %v2471_v18  ;;  %v2623_v56 = vpop.f32.mrb[71].mxu1  ;;  %2780 = vmatmul.mubr.bf16.vlgmr.msra.gmra.mrb[20].mxu0 %v2644_v33  ;;  %v2636_v25 = vmax.f32 %v2618_v54, 0.0  ;;  %v3534_v54 = vld [vmem:[%s3806_s14] sm:$0x3f] }
 0xa31   : > { %v2624_v29 = vadd.f32 %v2623_v56, %v2475_v27  ;;  %v2637_v57 = vmax.f32 %v2620_v26, 0.0  ;;  %v2855_v42 = vrot.slane %v3534_v54, %v2854_v50  ;;  %v2863_v55 = vrot.slane %v3534_v54, %v2862_v41 }
 0xa32   : > { %v2640_v38 = vmax.f32 %v2622_v6, 0.0 }
 0xa33   : > { %v2641_v58 = vmax.f32 %v2624_v29, 0.0 }
 0xa34   : > { %v2648_v14 = vpack.c.bf16 %v2640_v38, %v2636_v25 }
 0xa35   : > { %v2649_v60 = vpack.c.bf16 %v2641_v58, %v2637_v57 }
 0xa37   : > { %2787 = vmatprep.mubr.bf16.mxu0 %v2649_v60 }
 0xa38   : > { %2788 = vmatmul.mubr.bf16.gmra.mrb[24].mxu0 %v2648_v14 }
 0xb03   : > { %v2781_v61 = vpop.f32.mrb[20].mxu0 }
 0xb04   : > { %v3365_v51 = vadd.f32 %v4208_v28, %v2781_v61  ;;  %v2783_v0 = vpop.f32.mrb[21].mxu0 }
 0xb05   : > { %v2784_v32 = vpop.f32.mrb[22].mxu0 }
 0xb06   : > { %v3367_v63 = vadd.f32 %v4211_v59, %v2784_v32  ;;  %v2786_v1 = vpop.f32.mrb[23].mxu0  ;;  %v2800_v24 = vsel %vm718_vm3, %v3365_v51, 0.0 }
 0xb07   : > { %2801 = vadd.xlane.f32.xlu1 %v2800_v24  ;;  %v3612_v24 = vmov (!%p3205_p8), 0.0|0.0  }
 0xb08   : > { %v2803_v20 = vsel %vm718_vm3, %v3367_v63, 0.0  ;;  %3358 = vmatprep.subr.bf16.mxu0 (!%p3205_p8), %v3612_v24 }
 0xb09   : > { %2804 = vadd.xlane.f32.xlu0 %v2803_v20 }
 0xb0b   : > { %v2789_v48 = vpop.f32.mrb[24].mxu0 }
 0xb0c   : > { %v3369_v4 = vadd.f32 %v4214_v62, %v2789_v48  ;;  %v2791_v5 = vpop.f32.mrb[25].mxu0  ;;  %v3614_v48 = vmov (!%p3205_p8), 0.0  }
 0xb0d   : > { %v2792_v21 = vpop.f32.mrb[26].mxu0  ;;  %3355 = vmatprep.mubr.msk.f32.mxu0 (!%p3205_p8), %vm3613_vm4, %v3614_v48 }
 0xb0e   : > { %v3371_v15 = vadd.f32 %v4218_v3, %v2792_v21  ;;  %v2794_v7 = vpop.f32.mrb[27].mxu0  ;;  %v2806_v28 = vsel %vm718_vm3, %v3369_v4, 0.0 }
 0xb0f   : > { %2807 = vadd.xlane.f32.xlu1 %v2806_v28 }
 0xb10   : > { %v2809_v59 = vsel %vm718_vm3, %v3371_v15, 0.0 }
 0xb11   : > { %2810 = vadd.xlane.f32.xlu0 %v2809_v59 }
 0xb94   : > { %v2802_v8 = vpop.xlane.xlu1 %2801 }
 0xb95   : > { %v2812_v11 = vmul.f32 0.03125, %v2802_v8 }
 0xb96   : > { %v2805_v12 = vpop.xlane.xlu0 %2804 }
 0xb97   : > { %v2816_v10 = vsub.f32 %v3365_v51, %v2812_v11  ;;  %v2813_v13 = vmul.f32 0.03125, %v2805_v12 }
 0xb99   : > { %v2817_v47 = vsub.f32 %v3367_v63, %v2813_v13  ;;  %v2820_v22 = vmul.f32 %v2816_v10, %v2816_v10 }
 0xb9b   : > { %v2824_v62 = vsel %vm718_vm3, %v2820_v22, 0.0  ;;  %v2821_v16 = vmul.f32 %v2817_v47, %v2817_v47 }
 0xb9c   : > { %2825 = vadd.xlane.f32.xlu1 %v2824_v62  ;;  %v2808_v9 = vpop.xlane.xlu1 %2807 }
 0xb9d   : > { %v2814_v3 = vmul.f32 0.03125, %v2808_v9  ;;  %v2827_v17 = vsel %vm718_vm3, %v2821_v16, 0.0 }
 0xb9e   : > { %2828 = vadd.xlane.f32.xlu0 %v2827_v17  ;;  %v2811_v18 = vpop.xlane.xlu0 %2810 }
 0xb9f   : > { %v2818_v19 = vsub.f32 %v3369_v4, %v2814_v3  ;;  %v2815_v23 = vmul.f32 0.03125, %v2811_v18  ;;  %v2876_v4 = vld [vmem:[%s4325_s20] sm:$0xf] (!%p3205_p8) }
 0xba1   : > { %v2819_v27 = vsub.f32 %v3371_v15, %v2815_v23  ;;  %v2822_v34 = vmul.f32 %v2818_v19, %v2818_v19 }
 0xba3   : > { %v2830_v35 = vsel %vm718_vm3, %v2822_v34, 0.0  ;;  %v2823_v36 = vmul.f32 %v2819_v27, %v2819_v27 }
 0xba4   : > { %2831 = vadd.xlane.f32.xlu1 %v2830_v35 }
 0xba5   : > { %v2833_v37 = vsel %vm718_vm3, %v2823_v36, 0.0 }
 0xba6   : > { %2834 = vadd.xlane.f32.xlu0 %v2833_v37 }
 0xc29   : > { %v2826_v39 = vpop.xlane.xlu1 %2825 }
 0xc2a   : > { %v2836_v40 = vmul.f32 0.03125, %v2826_v39 }
 0xc2b   : > { %v2829_v30 = vpop.xlane.xlu0 %2828 }
 0xc2c   : > { %v2840_v43 = vadd.f32 1e-05, %v2836_v40  ;;  %v2837_v44 = vmul.f32 0.03125, %v2829_v30 }
 0xc2e   : > { %3526 = vrsqrt.f32 %v2840_v43  ;;  %v2841_v46 = vadd.f32 1e-05, %v2837_v44 }
 0xc30   : > { %3528 = vrsqrt.f32 %v2841_v46 }
 0xc31   : > { %v2832_v49 = vpop.xlane.xlu1 %2831 }
 0xc32   : > { %v2838_v2 = vmul.f32 0.03125, %v2832_v49 }
 0xc33   : > { %v2835_v52 = vpop.xlane.xlu0 %2834 }
 0xc34   : > { %v2842_v53 = vadd.f32 1e-05, %v2838_v2  ;;  %v2839_v33 = vmul.f32 0.03125, %v2835_v52 }
 0xc36   : > { %3530 = vrsqrt.f32 %v2842_v53  ;;  %v2843_v45 = vadd.f32 1e-05, %v2839_v33 }
 0xc38   : > { %v3527_v26 = vpop.eup %3526  ;;  %3532 = vrsqrt.f32 %v2843_v45 }
 0xc39   : > { %v2848_v6 = vmul.f32 %v3527_v26, %v2816_v10 }
 0xc3a   : > { %v3529_v56 = vpop.eup %3528 }
 0xc3b   : > { %v2856_v29 = vmul.f32 %v2855_v42, %v2848_v6  ;;  %v2849_v25 = vmul.f32 %v3529_v56, %v2817_v47 }
 0xc3d   : > { %v2864_v38 = vadd.f32 %v2863_v55, %v2856_v29  ;;  %v2857_v57 = vmul.f32 %v2855_v42, %v2849_v25 }
 0xc3f   : > { %2868 = vst.msk [vmem:[#allocation2] sm:$0xff] %vm718_vm3, %v2864_v38  ;;  %v2865_v58 = vadd.f32 %v2863_v55, %v2857_v57 }
 0xc40   : > { %v3531_v14 = vpop.eup %3530 }
 0xc41   : > { %2869 = vst.msk [vmem:[#allocation2 + $0x8] sm:$0xff] %vm718_vm3, %v2865_v58  ;;  %v2850_v31 = vmul.f32 %v3531_v14, %v2818_v19  ;;  %v3359_v1 = vpack.c.bf16 (!%p3205_p8), %v2865_v58, %v2864_v38 }
 0xc42   : > { %v3533_v60 = vpop.eup %3532 }
 0xc43   : > { %v2858_v61 = vmul.f32 %v2855_v42, %v2850_v31  ;;  %v2851_v51 = vmul.f32 %v3533_v60, %v2819_v27  ;;  %2875 = sbr.rel (%p3205_p8) target bundleno = 3538 (0xdd2), region = 88  ;;  %3360 = vmatpush3.bf16.msra.mxu0 (!%p3205_p8), %v3359_v1 }
 0xc44   : > { %3361 = vmatprep.subr.bf16.mxu0 (!%p3205_p8), %v3612_v24 }
 0xc45   : > { %v2866_v0 = vadd.f32 %v2863_v55, %v2858_v61  ;;  %v2859_v32 = vmul.f32 %v2855_v42, %v2851_v51 }
 0xc47   : > { %2870 = vst.msk [vmem:[#allocation2 + $0x10] sm:$0xff] %vm718_vm3, %v2866_v0  ;;  %v2867_v63 = vadd.f32 %v2863_v55, %v2859_v32 }
 0xc49   : > { %2871 = vst.msk [vmem:[#allocation2 + $0x18] sm:$0xff] %vm718_vm3, %v2867_v63  ;;  %v3362_v20 = vpack.c.bf16 (!%p3205_p8), %v2867_v63, %v2866_v0 }
 0xc4b   : > { %3363 = vmatpush3.bf16.msra.mxu0 %v3362_v20 }
 0xc4e   : > { %3356 = vmatmul.mubr.msk.f32.vlgmr.msra.gmra.mrb[0].mxu0 %vm718_vm3, %v2876_v4 }
 0xd21   : > { %v2946_v5 = vpop.f32.mrb[0].mxu0 }
 0xd22   : > { %v3357_v21 = vpop.f32.mrb[1].mxu0  ;;  %v2950_v15 = vmul.f32 %v2946_v5, %v2946_v5 }
 0xd24   : > { %v2952_v7 = vsel %vm2951_vm5, %v2950_v15, 0.0 }
 0xd25   : > { %2953 = vadd.xlane.f32.xlu0 %v2952_v7 }
 0xdb2   : > { %v2954_v28 = vpop.xlane.xlu0 %2953 }
 0xdb3   : > { %3535 = vrsqrt.f32 %v2954_v28  ;;  %vm2957_vm6 = vcmp.eq.f32.partialorder %v2954_v28, inf  ;;  %v2960_v11 = vand.u32 2147483648, %v2954_v28  ;;  %vm2959_vm7 = vcmp.eq.f32.partialorder %v2954_v28, 0.0 }
 0xdbd   : > { %v3536_v59 = vpop.eup %3535 }
 0xdbe   : > { %v2956_v8 = vmul.f32 %v3536_v59, %v2954_v28 }
 0xdc0   : > { %v2958_v12 = vsel %vm2957_vm6, %v2954_v28, %v2956_v8 }
 0xdc1   : > { %v2961_v10 = vsel %vm2959_vm7, %v2960_v11, %v2958_v12 }
 0xdc2   : > { %v2962_v13 = vadd.f32 1e-08, %v2961_v10 }
 0xdc4   : > { %3537 = vrcp.f32 %v2962_v13 }
 0xdce   : > { %v3538_v47 = vpop.eup %3537 }
 0xdcf   : > { %v2964_v22 = vmul.f32 %v3538_v47, %v2946_v5 }
 0xdd1   : > { %2965 = vst.msk [vmem:[%s4326_s19] sm:$0xf] %vm2951_vm5, %v2964_v22 }
 0xdd2 PF: > { %s4327_s16 = sld [smem:[#allocation8_spill]]  ;;  %s4328_s29 = sld [smem:[#allocation6_spill]] }
 0xdd3   : > { %s4329_s30 = sld [smem:[#allocation7_spill]]  ;;  %s4330_s15 = sld [smem:[#allocation9_spill]] }
 0xdd8   : > { %p24_p4 = scmp.ge.s32.totalorder %s4327_s16, 4  }
 0xdda   :  { %26 = sbr.rel (!%p24_p4) target bundleno = 7 (0x7), region = 138 }
 0xde1   :  { %2977 = vsyncpa [#allocation4], 1 }
 0xde2   :  { %2979 = vsyncpa [#allocation4 + $0x1], 1 }

</bundles_post_ra>
